<compile_context>
chip_gen: v7x
topology: tpu7x:2x2x1
jax: 0.10.0
libtpu: 0.0.40
codegen_flags: <defaults>
</compile_context>

<pallas_src>
import functools

import jax
import jax.numpy as jnp
import numpy as np
from jax.experimental import pallas as pl
from jax.experimental.pallas import tpu as pltpu


# ----------------------------------------------------------------------------
# Kernel 1: acc += adj @ s1 over K; finalize emits s2 = relu(acc + b1) @ W2blk.
#   s1  : (TK, P1)   bf16, column-stacked layer-1 supports (zero-padded lanes)
#   adj : (TM, TK)   bf16
#   b1  : (1, P1)    f32 (bias tiled across views, zero in padding lanes)
#   w2p : (P1, W)    f32 block-diag W2, zero-padded rows/cols
#   out : (TM, W)    bf16 layer-2 support slab
# ----------------------------------------------------------------------------
def _gcn_layer1_kernel(s1_ref, adj_ref, b1_ref, w2p_ref, out_ref, acc_ref):
    k = pl.program_id(1)

    @pl.when(k == 0)
    def _init():
        acc_ref[...] = jnp.zeros_like(acc_ref)

    acc_ref[...] += jnp.dot(adj_ref[...], s1_ref[...],
                            preferred_element_type=jnp.float32)

    @pl.when(k == pl.num_programs(1) - 1)
    def _finalize():
        h = jnp.maximum(acc_ref[...] + b1_ref[...], 0.0)            # relu(gc1)+pad
        out_ref[...] = jnp.dot(h, w2p_ref[...],
                               preferred_element_type=jnp.float32
                               ).astype(out_ref.dtype)


# ----------------------------------------------------------------------------
# Kernel 2: out += adj @ s2 over K (accumulated directly in the f32 output
# block); finalize applies b2, per-view log_softmax, attention fusion and the
# final log_softmax, writing the packed slab [o1 | o2 | o3 | final | 0...].
# ----------------------------------------------------------------------------
def _gcn_layer2_attn_kernel(s2_ref, adj_ref, b2_ref, wp1_ref, bp1_ref, wp2_ref,
                            out_ref, *, nviews, nclass):
    k = pl.program_id(1)

    @pl.when(k == 0)
    def _init():
        out_ref[...] = jnp.zeros_like(out_ref)

    out_ref[...] += jnp.dot(adj_ref[...], s2_ref[...],
                            preferred_element_type=jnp.float32)

    @pl.when(k == pl.num_programs(1) - 1)
    def _finalize():
        z = out_ref[...]                       # (TM, W) f32; cols >= 3*nclass are 0
        b2 = b2_ref[...]                       # (1, nclass)
        wp1 = wp1_ref[...]                     # (nclass, att_hidden)
        bp1 = bp1_ref[...]                     # (1, att_hidden)
        wp2 = wp2_ref[...]                     # (1, att_hidden) (row form of (hid,1))

        outs, scores = [], []
        for v in range(nviews):
            zv = z[:, v * nclass:(v + 1) * nclass] + b2
            m = jnp.max(zv, axis=-1, keepdims=True)
            sh = zv - m
            ov = sh - jnp.log(jnp.sum(jnp.exp(sh), axis=-1, keepdims=True))
            out_ref[:, v * nclass:(v + 1) * nclass] = ov      # direct slice write
            outs.append(ov)
            # Attention score: small MXU matmul (nclass->hidden), then a VPU
            # multiply + lane reduce for the (hidden->1) projection.
            hv = jnp.tanh(jnp.dot(ov, wp1, preferred_element_type=jnp.float32) + bp1)
            scores.append(jnp.sum(hv * wp2, axis=-1, keepdims=True))   # (TM, 1)

        # Stable softmax over the 3 views, weighted sum, final log_softmax.
        m_s = scores[0]
        for s in scores[1:]:
            m_s = jnp.maximum(m_s, s)
        es = [jnp.exp(s - m_s) for s in scores]
        denom = es[0]
        for e in es[1:]:
            denom = denom + e
        tmp = es[0] * outs[0]
        for v in range(1, nviews):
            tmp = tmp + es[v] * outs[v]
        tmp = tmp / denom

        mm = jnp.max(tmp, axis=-1, keepdims=True)
        sht = tmp - mm
        final = sht - jnp.log(jnp.sum(jnp.exp(sht), axis=-1, keepdims=True))
        out_ref[:, nviews * nclass:(nviews + 1) * nclass] = final


# ----------------------------------------------------------------------------
# Tiling helpers / wrapper
# ----------------------------------------------------------------------------
def _round_up(n, m):
    return ((n + m - 1) // m) * m


def _choose_tiles(n, tile_m, tile_k):
    """Pick (tm, tk, n_pad): n_pad multiple of 128 (and of tm, tk); tm mult of 8,
    tk mult of 128.  Prefer >=2 row tiles so the 'parallel' M axis can shard
    across v7x's two TensorCores."""
    n_pad = _round_up(n, 128)
    # K tile: largest multiple of 128 dividing n_pad, <= tile_k.
    tk = 128
    for cand in range(min(tile_k // 128, n_pad // 128), 0, -1):
        if (n_pad // 128) % cand == 0:
            tk = cand * 128
            break
    # M tile: largest multiple of 8 dividing n_pad, <= tile_m.
    tm = 8
    for cand in range(min(tile_m // 8, n_pad // 8), 0, -1):
        if (n_pad // 8) % cand == 0:
            tm = cand * 8
            break
    # Give the parallel row axis at least 2 tiles when possible (v7x megacore).
    while n_pad // tm < 2 and tm % 16 == 0 and n_pad % (tm // 2) == 0:
        tm //= 2
    return tm, tk, n_pad


def gcnpe_forward(x, datareal1, datareal2, adj, params, *, tile_m=1024, tile_k=2048):
    N, _ = x.shape
    nhid = params["w1"].shape[1]
    nclass = params["w2"].shape[1]
    att_hidden = params["att_w1"].shape[1]
    nviews = 3
    f32, bf16 = jnp.float32, jnp.bfloat16

    tm, tk, n_pad = _choose_tiles(N, tile_m, tile_k)
    grid = (n_pad // tm, n_pad // tk)
    gm = grid[0]

    P1 = _round_up(nviews * nhid, 128)            # layer-1 support slab width
    W = _round_up((nviews + 1) * nclass, 128)     # layer-2 / output slab width

    hi = jax.lax.Precision.HIGHEST
    w1 = params["w1"].astype(f32)
    w2 = params["w2"].astype(f32)

    # Hoisted feature transform (layer 1), padded + cast once in the wrapper.
    s1 = jnp.concatenate([jnp.dot(x.astype(f32), w1, precision=hi),
                          jnp.dot(datareal1.astype(f32), w1, precision=hi),
                          jnp.dot(datareal2.astype(f32), w1, precision=hi)], axis=1)
    s1 = jnp.pad(s1, ((0, n_pad - N), (0, P1 - nviews * nhid))).astype(bf16)

    # Block-diagonal W2 (used once per M tile in kernel 1's finalize), padded.
    w2_blk = jax.scipy.linalg.block_diag(*([w2] * nviews))           # (3*nhid, 3*nclass)
    w2p = jnp.pad(w2_blk, ((0, P1 - nviews * nhid), (0, W - nviews * nclass))).astype(f32)

    b1_row = jnp.pad(jnp.tile(params["b1"].astype(f32), nviews),
                     (0, P1 - nviews * nhid)).reshape(1, P1)
    b2_row = params["b2"].astype(f32).reshape(1, nclass)
    wp1 = params["att_w1"].astype(f32)                                # (nclass, att_hidden)
    bp1_row = params["att_b1"].astype(f32).reshape(1, att_hidden)
    wp2_row = params["att_w2"].astype(f32).reshape(1, att_hidden)     # (hid,1) -> row

    adj_p = jnp.pad(adj.astype(f32), ((0, n_pad - N), (0, n_pad - N))).astype(bf16)

    cparams = pltpu.CompilerParams(
        dimension_semantics=("parallel", "arbitrary"),
        vmem_limit_bytes=48 * 1024 * 1024,   # safe under v7x's 64 MiB physical VMEM
    )

    # ---------------- kernel 1: adj @ s1, fused relu+bias+W2 -----------------
    flops1 = 2 * n_pad * n_pad * P1 + 2 * n_pad * P1 * W
    bytes1 = (2 * n_pad * n_pad                 # adj (bf16), read once
              + gm * 2 * n_pad * P1             # s1 re-streamed per M tile
              + 2 * n_pad * W                   # s2 slab written (bf16)
              + 4 * (P1 * W + P1))              # weights/bias
    # TODO(synk): on v7x consider pipeline_mode=pl.Buffered(3) on the adj spec
    # (sweep); left at the default double-buffering here.
    s2 = pl.pallas_call(
        _gcn_layer1_kernel,
        out_shape=jax.ShapeDtypeStruct((n_pad, W), bf16),
        grid=grid,
        in_specs=[
            pl.BlockSpec((tk, P1), lambda m, k: (k, 0)),
            pl.BlockSpec((tm, tk), lambda m, k: (m, k)),
            pl.BlockSpec((1, P1), lambda m, k: (0, 0)),
            pl.BlockSpec((P1, W), lambda m, k: (0, 0)),
        ],
        out_specs=pl.BlockSpec((tm, W), lambda m, k: (m, 0)),
        scratch_shapes=[pltpu.VMEM((tm, P1), f32)],
        compiler_params=cparams,
        cost_estimate=pl.CostEstimate(
            flops=flops1, transcendentals=0, bytes_accessed=bytes1),
    )(s1, adj_p, b1_row, w2p)
    # TODO(synk): training-mode stochastic dropout omitted; inference semantics
    # (identity) are implemented here.

    # -------- kernel 2: adj @ s2 + bias + per-view log_softmax + attention ----
    kernel2 = functools.partial(_gcn_layer2_attn_kernel, nviews=nviews, nclass=nclass)
    flops2 = (2 * n_pad * n_pad * W
              + 2 * n_pad * nviews * nclass * att_hidden)
    bytes2 = (2 * n_pad * n_pad                 # adj (bf16), read once
              + gm * 2 * n_pad * W              # s2 slab re-streamed per M tile
              + 4 * n_pad * W)                  # f32 output slab
    trans2 = n_pad * (nviews * (nclass + 1 + att_hidden) + nviews + nclass + 1)
    slab = pl.pallas_call(
        kernel2,
        out_shape=jax.ShapeDtypeStruct((n_pad, W), f32),
        grid=grid,
        in_specs=[
            pl.BlockSpec((tk, W), lambda m, k: (k, 0)),
            pl.BlockSpec((tm, tk), lambda m, k: (m, k)),
            pl.BlockSpec((1, nclass), lambda m, k: (0, 0)),
            pl.BlockSpec((nclass, att_hidden), lambda m, k: (0, 0)),
            pl.BlockSpec((1, att_hidden), lambda m, k: (0, 0)),
            pl.BlockSpec((1, att_hidden), lambda m, k: (0, 0)),
        ],
        out_specs=pl.BlockSpec((tm, W), lambda m, k: (m, 0)),
        compiler_params=cparams,
        cost_estimate=pl.CostEstimate(
            flops=flops2, transcendentals=trans2, bytes_accessed=bytes2),
    )(s2, adj_p, b2_row, wp1, bp1_row, wp2_row)

    o1 = slab[:N, 0 * nclass:1 * nclass]
    o2 = slab[:N, 1 * nclass:2 * nclass]
    o3 = slab[:N, 2 * nclass:3 * nclass]
    final = slab[:N, 3 * nclass:4 * nclass]
    return [o1, o2, o3], final


# Pure-JAX f32 reference for verification.
def _ref_forward(x, d1, d2, adj, p):
    mm = lambda a, b: jnp.dot(a, b, precision=jax.lax.Precision.HIGHEST)

    def gcn(inp, w, b):
        return mm(adj, mm(inp, w)) + b

    def logsm(z):
        return jax.nn.log_softmax(z, axis=-1)

    def branch(inp):
        h = jax.nn.relu(gcn(inp, p["w1"], p["b1"]))
        return logsm(gcn(h, p["w2"], p["b2"]))

    o1, o2, o3 = branch(x), branch(d1), branch(d2)

    def proj(o):
        return mm(jnp.tanh(mm(o, p["att_w1"]) + p["att_b1"]), p["att_w2"])  # (N, 1)

    s = jnp.concatenate([proj(o1), proj(o2), proj(o3)], axis=-1)  # (N, 3)
    beta = jax.nn.softmax(s, axis=-1)
    tmp = beta[:, 0:1] * o1 + beta[:, 1:2] * o2 + beta[:, 2:3] * o3
    return [o1, o2, o3], logsm(tmp)


if __name__ == "__main__":
    N, nfeat, nhid, nclass, att_hidden = 512, 32, 32, 8, 16

    key = jax.random.PRNGKey(0)
    ks = jax.random.split(key, 10)

    x = jax.random.normal(ks[0], (N, nfeat), jnp.float32)
    datareal1 = jax.random.normal(ks[1], (N, nfeat), jnp.float32)
    datareal2 = jax.random.normal(ks[2], (N, nfeat), jnp.float32)

    # symmetric, degree-normalized adjacency with self loops
    a = jax.random.uniform(ks[3], (N, N), jnp.float32)
    adj = (a + a.T) * 0.5 + jnp.eye(N, dtype=jnp.float32)
    deg = jnp.sum(adj, axis=1)
    adj = adj / jnp.sqrt(deg[:, None] * deg[None, :])

    params = {
        # GraphConvolution gc1: (nfeat -> nhid)
        "w1": 0.1 * jax.random.normal(ks[4], (nfeat, nhid), jnp.float32),
        "b1": 0.1 * jax.random.normal(ks[5], (nhid,), jnp.float32),
        # GraphConvolution gc2: (nhid -> nclass)
        "w2": 0.1 * jax.random.normal(ks[6], (nhid, nclass), jnp.float32),
        "b2": 0.1 * jax.random.normal(ks[7], (nclass,), jnp.float32),
        # Attention: Linear(nclass, 16) -> tanh -> Linear(16, 1, bias=False)
        "att_w1": 0.1 * jax.random.normal(ks[8], (nclass, att_hidden), jnp.float32),
        "att_b1": jnp.zeros((att_hidden,), jnp.float32),
        "att_w2": 0.1 * jax.random.normal(ks[9], (att_hidden, 1), jnp.float32),
    }

    # tile_m/tile_k = 256 -> grid (2, 2): exercises the parallel row axis and
    # the K-accumulation path on a real multi-tile grid.
    outputs, finaloutput = gcnpe_forward(
        x, datareal1, datareal2, adj, params, tile_m=256, tile_k=256)
    jax.block_until_ready(finaloutput)

    ref_outputs, ref_final = _ref_forward(x, datareal1, datareal2, adj, params)
    # bf16 adj / activation streams (f32 accumulation) -> relaxed tolerance.
    for got, ref in zip(outputs, ref_outputs):
        np.testing.assert_allclose(np.asarray(got), np.asarray(ref),
                                   atol=2e-2, rtol=2e-2)
    np.testing.assert_allclose(np.asarray(finaloutput), np.asarray(ref_final),
                               atol=2e-2, rtol=2e-2)

    print("KERNEL_OK")
</pallas_src>

<mosaic_0001>
module attributes {stable_mosaic.version = 11 : i64} {
  func.func @_gcn_layer1_kernel(%arg0: i32, %arg1: i32, %arg2: memref<256x128xbf16, #tpu.memory_space<vmem>>, %arg3: memref<256x256xbf16, #tpu.memory_space<vmem>>, %arg4: memref<1x128xf32, #tpu.memory_space<vmem>>, %arg5: memref<128x128xf32, #tpu.memory_space<vmem>>, %arg6: memref<256x128xbf16, #tpu.memory_space<vmem>>, %arg7: memref<256x128xf32, #tpu.memory_space<vmem>>) attributes {dimension_semantics = [#tpu.dimension_semantics<parallel>, #tpu.dimension_semantics<arbitrary>], iteration_bounds = array<i64: 2, 2>, scalar_prefetch = 0 : i64, scratch_operands = 1 : i64, tpu.core_type = #tpu.core_type<tc>, window_params = [{transform_indices = @transform_0, window_bounds = array<i64: 256, 128>}, {transform_indices = @transform_1, window_bounds = array<i64: 256, 256>}, {pipeline_mode = #tpu.pipeline_mode<synchronous>, transform_indices = @transform_2, window_bounds = array<i64: 1, 128>}, {pipeline_mode = #tpu.pipeline_mode<synchronous>, transform_indices = @transform_3, window_bounds = array<i64: 128, 128>}, {transform_indices = @transform_4, window_bounds = array<i64: 256, 128>}]} {
    %c0_i32 = arith.constant 0 : i32
    %0 = arith.cmpi eq, %arg1, %c0_i32 : i32
    %1 = arith.extui %0 : i1 to i32
    %c0_i32_0 = arith.constant 0 : i32
    %2 = arith.cmpi ne, %1, %c0_i32_0 : i32
    scf.if %2 {
      %cst_9 = arith.constant 0.000000e+00 : f32
      %12 = vector.broadcast %cst_9 : f32 to vector<256x128xf32>
      %c0_10 = arith.constant 0 : index
      %c0_11 = arith.constant 0 : index
      %13 = vector.load %arg7[%c0_10, %c0_11] : memref<256x128xf32, #tpu.memory_space<vmem>>, vector<256x128xf32>
      tpu.vector_store %arg7[%c0_10, %c0_11], %12 {strides = array<i32>} : memref<256x128xf32, #tpu.memory_space<vmem>>, vector<256x128xf32>,
    } else {
    }
    %c0 = arith.constant 0 : index
    %c0_1 = arith.constant 0 : index
    %3 = vector.load %arg7[%c0, %c0_1] : memref<256x128xf32, #tpu.memory_space<vmem>>, vector<256x128xf32>
    %c0_2 = arith.constant 0 : index
    %c0_3 = arith.constant 0 : index
    %4 = vector.load %arg3[%c0_2, %c0_3] : memref<256x256xbf16, #tpu.memory_space<vmem>>, vector<256x256xbf16>
    %c0_4 = arith.constant 0 : index
    %c0_5 = arith.constant 0 : index
    %5 = vector.load %arg2[%c0_4, %c0_5] : memref<256x128xbf16, #tpu.memory_space<vmem>>, vector<256x128xbf16>
    %cst = arith.constant dense<0.000000e+00> : vector<256x128xf32>
    %6 = tpu.matmul %4, %5, %cst {dimension_numbers = #tpu.dot_dimension_numbers<[1], [0], [0], [1], [0, 0, 1, 1], [], []>} : vector<256x256xbf16>, vector<256x128xbf16>, vector<256x128xf32> -> vector<256x128xf32>
    %7 = arith.addf %3, %6 : vector<256x128xf32>
    %c0_6 = arith.constant 0 : index
    %c0_7 = arith.constant 0 : index
    %8 = vector.load %arg7[%c0_6, %c0_7] : memref<256x128xf32, #tpu.memory_space<vmem>>, vector<256x128xf32>
    tpu.vector_store %arg7[%c0_6, %c0_7], %7 {strides = array<i32>} : memref<256x128xf32, #tpu.memory_space<vmem>>, vector<256x128xf32>,
    %c1_i32 = arith.constant 1 : i32
    %9 = arith.cmpi eq, %arg1, %c1_i32 : i32
    %10 = arith.extui %9 : i1 to i32
    %c0_i32_8 = arith.constant 0 : i32
    %11 = arith.cmpi ne, %10, %c0_i32_8 : i32
    scf.if %11 {
      %c0_9 = arith.constant 0 : index
      %c0_10 = arith.constant 0 : index
      %12 = vector.load %arg7[%c0_9, %c0_10] : memref<256x128xf32, #tpu.memory_space<vmem>>, vector<256x128xf32>
      %c0_11 = arith.constant 0 : index
      %c0_12 = arith.constant 0 : index
      %13 = vector.load %arg4[%c0_11, %c0_12] : memref<1x128xf32, #tpu.memory_space<vmem>>, vector<1x128xf32>
      %14 = vector.broadcast %13 : vector<1x128xf32> to vector<256x128xf32>
      %15 = arith.addf %12, %14 : vector<256x128xf32>
      %cst_13 = arith.constant 0.000000e+00 : f32
      %16 = vector.broadcast %cst_13 : f32 to vector<256x128xf32>
      %17 = arith.maximumf %15, %16 : vector<256x128xf32>
      %c0_14 = arith.constant 0 : index
      %c0_15 = arith.constant 0 : index
      %18 = vector.load %arg5[%c0_14, %c0_15] : memref<128x128xf32, #tpu.memory_space<vmem>>, vector<128x128xf32>
      %cst_16 = arith.constant dense<0.000000e+00> : vector<256x128xf32>
      %19 = tpu.matmul %17, %18, %cst_16 {dimension_numbers = #tpu.dot_dimension_numbers<[1], [0], [0], [1], [0, 0, 1, 1], [], []>} : vector<256x128xf32>, vector<128x128xf32>, vector<256x128xf32> -> vector<256x128xf32>
      %20 = arith.truncf %19 : vector<256x128xf32> to vector<256x128xbf16>
      %c0_17 = arith.constant 0 : index
      %c0_18 = arith.constant 0 : index
      %21 = vector.load %arg6[%c0_17, %c0_18] : memref<256x128xbf16, #tpu.memory_space<vmem>>, vector<256x128xbf16>
      tpu.vector_store %arg6[%c0_17, %c0_18], %20 {strides = array<i32>} : memref<256x128xbf16, #tpu.memory_space<vmem>>, vector<256x128xbf16>,
    } else {
    }
    return
  }
  func.func @transform_0(%arg0: i32, %arg1: i32) -> (i32, i32) {
    %c0_i32 = arith.constant 0 : i32
    %c0_i32_0 = arith.constant 0 : i32
    return %arg1, %c0_i32 : i32, i32
  }
  func.func @transform_1(%arg0: i32, %arg1: i32) -> (i32, i32) {
    %c0_i32 = arith.constant 0 : i32
    return %arg0, %arg1 : i32, i32
  }
  func.func @transform_2(%arg0: i32, %arg1: i32) -> (i32, i32) {
    %c0_i32 = arith.constant 0 : i32
    %c0_i32_0 = arith.constant 0 : i32
    %c0_i32_1 = arith.constant 0 : i32
    return %c0_i32, %c0_i32_0 : i32, i32
  }
  func.func @transform_3(%arg0: i32, %arg1: i32) -> (i32, i32) {
    %c0_i32 = arith.constant 0 : i32
    %c0_i32_0 = arith.constant 0 : i32
    %c0_i32_1 = arith.constant 0 : i32
    return %c0_i32, %c0_i32_0 : i32, i32
  }
  func.func @transform_4(%arg0: i32, %arg1: i32) -> (i32, i32) {
    %c0_i32 = arith.constant 0 : i32
    %c0_i32_0 = arith.constant 0 : i32
    return %arg0, %c0_i32 : i32, i32
  }
}

</mosaic_0001>

<bundles_post_ra>
// kernel: tpu_custom_call.1
= control target key start
LH: loop header
LB: loop body
LE: loop exit
PB: predicated region body
PF: predicated region fallthrough
CT: control target
= control target key end

     0   :  { %s3066_s0 = inlined_call_operand.hbm [shape: bf16[512,128], index: 0, kind: input, shape index: {}]   ;;  %s3067_s1 = inlined_call_operand.hbm [shape: bf16[512,512], index: 1, kind: input, shape index: {}]   ;;  %s3068_s2 = inlined_call_operand.vmem [shape: f32[1,128], index: 2, kind: input, shape index: {}]   ;;  %s3069_s3 = inlined_call_operand.hbm [shape: f32[128,128], index: 3, kind: input, shape index: {}]   ;;  %s3070_s4 = inlined_call_operand.hbm [shape: bf16[512,128], index: 4, kind: output, shape index: {}]  }
   0x1   :  { %3090 = sst [smem:[#allocation24_spill]] %s3066_s0 }
   0x2   :  { %3091 = sst [smem:[#allocation25_spill]] %s3068_s2 }
   0x3   :  { %3092 = sst [smem:[#allocation26_spill]] %s3069_s3 }
   0x4   :  { %3093 = sst [smem:[#allocation27_spill]] %s3070_s4 }
   0x5   :  { %9 = vsyncpa [#allocation4], 0 }
   0x6   :  { %11 = vsyncpa [#allocation4 + $0x1], 0 }
   0x7   :  { %12 = vsyncpa [#allocation7], 0 }
   0x8   :  { %14 = vsyncpa [#allocation7 + $0x1], 0 }
   0x9   :  { %15 = vsyncpa [#allocation5], 0 }
   0xa   :  { %17 = vsyncpa [#allocation5 + $0x1], 0  ;;  %s2581_s15 = smov 0   ;;  %s2583_s16 = smov 0  }
   0xb   :  { %s2585_s17 = smov 0   ;;  %s2587_s18 = smov 0  }
   0xc   :  { %s2589_s19 = smov 0   ;;  %s2591_s20 = smov 0  }
   0xd   :  { %s2593_s21 = smov 0   ;;  %s2595_s22 = smov 0  }
   0xe   :  { %s2597_s23 = smov 0   ;;  %s2599_s24 = smov 0  }
   0xf   :  { %s2601_s25 = smov 0   ;;  %s2603_s26 = smov 0  }
  0x10   :  { %s2605_s27 = smov 0   ;;  %s2607_s28 = smov 0  }
  0x11 LB: > { %3094 = sst [smem:[#allocation14_spill]] %s2490_s15  ;;  %s2648_s29 = sadd.s32 4294967295, %s2542_s28   ;;  %s2542_s28 = sphi %s2607_s28, %s23_s28   ;;  %s2538_s27 = sphi %s2605_s27, %s3155_s27   ;;  %s2534_s26 = sphi %s2603_s26, %s3154_s26   ;;  %s2530_s25 = sphi %s2601_s25, %s3153_s25   ;;  %s2526_s24 = sphi %s2599_s24, %s3152_s24   ;;  %s2522_s23 = sphi %s2597_s23, %s3151_s23   ;;  %s2518_s22 = sphi %s2595_s22, %s3150_s22   ;;  %s2514_s21 = sphi %s2593_s21, %s3149_s21   ;;  %s2510_s20 = sphi %s2591_s20, %s3148_s20   ;;  %s2506_s19 = sphi %s2589_s19, %s3147_s19   ;;  %s2502_s18 = sphi %s2587_s18, %s3146_s18   ;;  %s2498_s17 = sphi %s2585_s17, %s3145_s17   ;;  %s2494_s16 = sphi %s2583_s16, %s3144_s16   ;;  %s2490_s15 = sphi %s2581_s15, %s3140_s15  }
  0x12   : > { %3095 = sst [smem:[#allocation15_spill]] %s2494_s16  ;;  %s1547_s30 = sadd.s32 4294967294, %s2542_s28  }
  0x13   : > { %3096 = sst [smem:[#allocation16_spill]] %s2526_s24  ;;  %p55_p0 = scmp.ne.s32.totalorder %s2518_s22, %s2514_s21 }
  0x14   : > { %3097 = sst [smem:[#allocation17_spill]] %s2530_s25  ;;  %p3073_p1 = scmp.eq.s32.totalorder %s2648_s29, 0 }
  0x15   : > { %p83_p3 = scmp.ne.s32.totalorder %s2506_s19, %s2502_s18  ;;  %p148_p6 = scmp.ne.s32.totalorder %s2498_s17, %s2494_s16 }
  0x16   : > { %p2658_p4 = por %p3073_p1, %p55_p0  ;;  %p149_p7 = scmp.eq.s32.totalorder %s2648_s29, 3 }
  0x17   : > { %p2665_p5 = por %p83_p3, %p3073_p1  ;;  %p154_p8 = scmp.ne.s32.totalorder %s2494_s16, %s2490_s15 }
  0x18   : > { %s3098_s5 = scalar_select %p2658_p4, 1, 0 }
  0x19   : > { %s3099_s7 = scalar_select %p2665_p5, 1, 0 }
  0x1a   : > { %p155_p9 = scmp.eq.s32.totalorder %s1547_s30, 3  ;;  %p1548_p10 = scmp.ge.s32.totalorder %s2542_s28, 1 }
  0x1b   : > { %3100 = sst [smem:[#allocation18_spill]] %s3099_s7  ;;  %p2675_p11 = por %p149_p7, %p148_p6 }
  0x1c   : > { %p162_p12 = scmp.lt.s32.totalorder %s2542_s28, 5  ;;  %p2680_p13 = por %p155_p9, %p154_p8 }
  0x1d   : > { %s3101_s8 = scalar_select %p2675_p11, 1, 0 }
  0x1e   : > { %s3103_s9 = scalar_select %p2680_p13, 1, 0 }
  0x1f   : > { %3102 = sst [smem:[#allocation19_spill]] %s3101_s8  ;;  %p2684_p0 = pnand %p1548_p10, %p162_p12 }
  0x20   : > { %3104 = sst [smem:[#allocation20_spill]] %s3103_s9  ;;  %s2544_s11 = smov [#allocation8]  }
  0x21   : > { %s3105_s10 = scalar_select %p2684_p0, 1, 0 }
  0x22   : > { %s177_s12 = sshll.u32 %s2544_s11, 4  ;;  %p2096_p3 = pneg %p2684_p0  ;;  %s178_s12 = int_to_ptr.vmem [resolvable:$true] %s177_s12 }
  0x23   : > { %s3107_s3 = sld [smem:[#allocation26_spill]] }
  0x24   : > { %p2692_p6 = pnand %p2096_p3, %p3073_p1 }
  0x26   : > { %p2302_p8 = pneg %p2692_p6 }
  0x29   : > { %s2300_s21 = scalar_lea.hbm %s3107_s3, 2048 }
  0x2a   : > { %p2301_p7 = scmp.ne.s32.totalorder %s3107_s3, %s2300_s21  ;;  %p2307_p12 = scmp.lt.u32.totalorder %s2300_s21, %s3107_s3 }
  0x2c   : > { %p2303_p9 = pnand %p2302_p8, %p2301_p7 }
  0x2e   : > { %p2304_p10 = pneg %p2303_p9 }
  0x30   : > { %p2309_p3 = pnand %p2307_p12, %p2304_p10 }
  0x32   : > { %2312 = shalt.err (!%p2309_p3)
}
  0x33   : > { %s2313_s15 = scalar_lea.vmem %s178_s12, 2048  ;;  %p2321_p11 = scmp.lt.s32.totalorder %s178_s12, %s178_s12 }
  0x34   : > { %p2314_p1 = scmp.ne.s32.totalorder %s178_s12, %s2313_s15  ;;  %p2322_p5 = scmp.lt.s32.totalorder %s2313_s15, %s2313_s15 }
  0x36   : > { %p2316_p2 = pnand %p2314_p1, %p2302_p8  ;;  %p2323_p4 = por %p2322_p5, %p2321_p11 }
  0x38   : > { %p2317_p13 = pneg %p2316_p2 }
  0x3a   : > { %p2324_p0 = pnand %p2323_p4, %p2317_p13 }
  0x3c   : > { %2327 = shalt.err (!%p2324_p0)
}
  0x3d   : > { %s3078_s6 = smov 128   ;;  %s3079_s9 = smov 8  }
  0x3e   : > { %2099 = dma.hbm_to_vmem [thread:$0]  (!%p2692_p6), %s3107_s3, 2048, %s178_s12, [#allocation7], %s3078_s6, %s3078_s6, %s3079_s9  }
  0x3f   : > { %s32_s18 = sadd.s32 1, %s2534_s26  ;;  %s35_s21 = sadd.s32 1, %s2538_s27 }
  0x40   : > { %p33_p1 = scmp.ge.s32.totalorder %s32_s18, 2  ;;  %s42_s30 = sadd.s32 1, %s2522_s23 }
  0x41   : > { %p49_p2 = scmp.ne.s32.totalorder %s2522_s23, %s2518_s22  ;;  %p50_p4 = scmp.eq.s32.totalorder %s2542_s28, 0 }
  0x42   : > { %s3157_s18 = smov (%p33_p1, %s32_s18), 0  ;;  %s3159_s21 = smov (!%p33_p1, %s35_s21), %s2538_s27 }
  0x43   : > { %3108 = sst [smem:[#allocation21_spill]] %s3157_s18  ;;  %s39_s13 = ssub.s32 %s2534_s26, %s3157_s18 }
  0x44   : > { %p2726_p5 = por %p50_p4, %p49_p2  ;;  %p37_p11 = scmp.ge.s32.totalorder %s3159_s21, 2 }
  0x45   : > { %p40_p13 = scmp.eq.s32.totalorder %s39_s13, 0  ;;  %s70_s11 = sadd.s32 1, %s2510_s20 }
  0x46   : > { %p3110_p0 = scmp.ne.s32.totalorder %s2510_s20, %s2506_s19  ;;  %s3161_s21 = smov (%p37_p11, %s3159_s21), 0 }
  0x47   : > { %3112 = sst [smem:[#allocation22_spill]] %s3161_s21  ;;  %s65_s6 = ssub.s32 %s2538_s27, %s3161_s21 }
  0x48   : > { %p2734_p6 = por %p3110_p0, %p50_p4  ;;  %p3088_p7 = scmp.lt.s32.totalorder %s2542_s28, 4 }
  0x49   : > { %s2741_s14 = scalar_select %p40_p13, %s2522_s23, %s42_s30  }
  0x4a   : > { %s67_s9 = sor.u32 %s65_s6, %s39_s13  ;;  %p136_p8 = scmp.eq.s32.totalorder %s65_s6, 0 }
  0x4b   : > { %3113 = sst [smem:[#allocation23_spill]] %s2741_s14  ;;  %p68_p9 = scmp.eq.s32.totalorder %s67_s9, 0 }
  0x4c   : > { %s191_s3 = sand.u32 1, %s2522_s23   ;;  %s3114_s18 = sadd.s32 1, %s2498_s17 }
  0x4d   : > { %s2750_s4 = scalar_select %p136_p8, %s2498_s17, %s3114_s18  }
  0x4e   : > { %s2753_s8 = scalar_select %p68_p9, %s2510_s20, %s70_s11  }
  0x4f   : > { %s1551_s25 = sshll.u32 %s191_s3, 7  ;;  %s1652_s2 = sshll.u32 %s2534_s26, 11 }
  0x50   : > { %s3115_s0 = sld [smem:[#allocation24_spill]]  ;;  %s195_s30 = scalar_lea.vmem [#allocation3], %s1551_s25 }
  0x51   : > { %s202_s6 = sshll.u32 %s195_s30, 4  ;;  %p2767_p10 = pnand %p3088_p7, %p2726_p5  ;;  %s2761_s6 = int_to_ptr.vmem [resolvable:$true] %s202_s6 }
  0x52   : > { %s1556_s18 = sshll.u32 %s2534_s26, 1  ;;  %s2772_s16 = scalar_lea.sflag [#allocation4], %s191_s3 }
  0x53   : > { %p2330_p3 = pneg %p2767_p10 }
  0x56   : > { %s2759_s7 = scalar_lea.hbm %s3115_s0, %s1652_s2  ;;  %s2333_s13 = scalar_lea.hbm %s3115_s0, 4096 }
  0x57   : > { %s2328_s2 = scalar_lea.hbm %s2759_s7, 2048  ;;  %p2334_p4 = scmp.lt.u32.totalorder %s2759_s7, %s3115_s0 }
  0x58   : > { %p2329_p12 = scmp.ne.s32.totalorder %s2759_s7, %s2328_s2  ;;  %p2335_p5 = scmp.lt.u32.totalorder %s2333_s13, %s2328_s2 }
  0x59   : > { %p2337_p13 = scmp.lt.u32.totalorder %s2328_s2, %s2759_s7 }
  0x5a   : > { %p2331_p1 = pnand %p2330_p3, %p2329_p12  ;;  %p2336_p11 = por %p2335_p5, %p2334_p4 }
  0x5c   : > { %p2332_p2 = pneg %p2331_p1  ;;  %p2338_p0 = por %p2337_p13, %p2336_p11 }
  0x5e   : > { %p2339_p8 = pnand %p2338_p0, %p2332_p2 }
  0x60   : > { %2342 = shalt.err (!%p2339_p8)
}
  0x61   : > { %s2343_s3 = scalar_lea.vmem %s2761_s6, 2048  ;;  %s2547_s30 = smov [#allocation3]  }
  0x62   : > { %p2344_p9 = scmp.ne.s32.totalorder %s2761_s6, %s2343_s3  ;;  %s2348_s24 = sshll.u32 %s2547_s30, 4  ;;  %s2349_s24 = int_to_ptr.vmem [resolvable:$false] %s2348_s24 }
  0x63   : > { %s2350_s25 = scalar_lea.vmem %s2349_s24, 4096  ;;  %p2351_p7 = scmp.lt.s32.totalorder %s2761_s6, %s2349_s24 }
  0x64   : > { %p2346_p12 = pnand %p2344_p9, %p2330_p3  ;;  %p2352_p4 = scmp.lt.s32.totalorder %s2350_s25, %s2343_s3 }
  0x66   : > { %p2347_p1 = pneg %p2346_p12  ;;  %p2353_p5 = por %p2352_p4, %p2351_p7 }
  0x68   : > { %p2354_p11 = pnand %p2353_p5, %p2347_p1 }
  0x6a   : > { %2357 = shalt.err (!%p2354_p11)
}
  0x6b   : > { %s2548_s2 = smov 64   ;;  %s2549_s13 = smov 4  }
  0x6c   : > { %2103 = dma.hbm_to_vmem [thread:$0]  (!%p2767_p10), %s2759_s7, 2048, %s2761_s6, %s2772_s16, %s2548_s2, %s2548_s2, %s2549_s13  }
  0x6d   : > { %p3117_p3 = scmp.lt.s32.totalorder %s2542_s28, 4  ;;  %s212_s11 = sand.u32 1, %s2542_s28  }
  0x6e   : > { %s214_s3 = sand.u32 1, %s2510_s20   ;;  %s1653_s24 = sshll.u32 %s2538_s27, 7 }
  0x6f   : > { %p2804_p2 = pnand %p3117_p3, %p2734_p6  ;;  %s1554_s30 = sshll.u32 %s214_s3, 8 }
  0x70   : > { %s223_s25 = sadd.s32 %s1653_s24, %s1556_s18  ;;  %s216_s0 = scalar_lea.vmem [#allocation6], %s1554_s30 }
  0x71   : > { %s226_s21 = sshll.u32 %s216_s0, 4  ;;  %s1558_s14 = sshll.u32 %s223_s25, 6  ;;  %s2813_s21 = int_to_ptr.vmem [resolvable:$true] %s226_s21 }
  0x72   : > { %s2818_s6 = scalar_lea.hbm %s3067_s1, %s1558_s14  ;;  %s2820_s9 = scalar_lea.sflag [#allocation7], %s212_s11 }
  0x73   : > { %s2358_s16 = scalar_lea.hbm %s2818_s6, 4096  ;;  %p2360_p7 = pneg %p2804_p2 }
  0x74   : > { %p2359_p6 = scmp.ne.s32.totalorder %s2818_s6, %s2358_s16  ;;  %s2363_s2 = scalar_lea.hbm %s3067_s1, 16384 }
  0x75   : > { %p2364_p0 = scmp.lt.u32.totalorder %s2818_s6, %s3067_s1  ;;  %p2365_p8 = scmp.lt.u32.totalorder %s2363_s2, %s2358_s16 }
  0x76   : > { %p2361_p10 = pnand %p2360_p7, %p2359_p6  ;;  %p2367_p12 = scmp.lt.u32.totalorder %s2358_s16, %s2818_s6 }
  0x77   : > { %p2366_p9 = por %p2365_p8, %p2364_p0 }
  0x78   : > { %p2362_p13 = pneg %p2361_p10 }
  0x79   : > { %p2368_p1 = por %p2367_p12, %p2366_p9 }
  0x7b   : > { %p2369_p4 = pnand %p2368_p1, %p2362_p13 }
  0x7d   : > { %2372 = shalt.err (!%p2369_p4)
}
  0x7e   : > { %s2373_s11 = scalar_lea.vmem %s2813_s21, 4096  ;;  %s2550_s3 = smov [#allocation6]  }
  0x7f   : > { %p2374_p5 = scmp.ne.s32.totalorder %s2813_s21, %s2373_s11  ;;  %s2378_s30 = sshll.u32 %s2550_s3, 4  ;;  %s2379_s30 = int_to_ptr.vmem [resolvable:$false] %s2378_s30 }
  0x80   : > { %s2380_s24 = scalar_lea.vmem %s2379_s30, 8192  ;;  %p2381_p6 = scmp.lt.s32.totalorder %s2813_s21, %s2379_s30 }
  0x81   : > { %p2376_p11 = pnand %p2374_p5, %p2360_p7  ;;  %p2382_p10 = scmp.lt.s32.totalorder %s2380_s24, %s2373_s11 }
  0x83   : > { %p2377_p3 = pneg %p2376_p11  ;;  %p2383_p0 = por %p2382_p10, %p2381_p6 }
  0x85   : > { %p2384_p8 = pnand %p2383_p0, %p2377_p3 }
  0x87   : > { %2387 = shalt.err (!%p2384_p8)
}
  0x88   : > { %s2551_s25 = smov 256   ;;  %s3119_s7 = smov 8  }
  0x89   : > { %s3120_s15 = smov 128   ;;  %p3121_p7 = scmp.ne.s32.totalorder %s3105_s10, 0 }
  0x8a   : > { %2106 = dma.hbm_to_vmem [thread:$0]  (!%p2804_p2), %s2818_s6, 4096, %s2813_s21, %s2820_s9, %s2551_s25, %s3120_s15, %s3119_s7  }
  0x8b   : > { %238 = sbr.rel (%p3121_p7) target bundleno = 774 (0x306), region = 36  ;;  %s240_s16 = sand.u32 (!%p3121_p7), 1, %s2518_s22  }
  0x8c   : > { %s1560_s0 = sshll.u32 (!%p3121_p7), %s240_s16, 7  ;;  %s241_s18 = scalar_lea.sflag (!%p3121_p7), [#allocation4], %s240_s16 }
  0x8d   : > { %s2853_s2 = scalar_lea.vmem (!%p3121_p7), [#allocation3], %s1560_s0  ;;  %p3122_p13 = scmp.ne.s32.totalorder (!%p3121_p7), %s3098_s5, 0 }
  0x92   : > { %2473 = dma.done.wait (%p3122_p13), %s241_s18, 2048  }
  0x93   : > { %2475 = vsyncadd (%p3122_p13), %s241_s18, 4294965248  ;;  %s3123_s12 = sld [smem:[#allocation18_spill]]  ;;  %s249_s14 = sand.u32 1, %s2648_s29  }
  0x94   : > { %s251_s21 = sand.u32 1, %s2506_s19   ;;  %s250_s10 = scalar_lea.sflag [#allocation7], %s249_s14 }
  0x95   : > { %s1561_s6 = sshll.u32 %s251_s21, 8 }
  0x96   : > { %s2861_s9 = scalar_lea.vmem [#allocation6], %s1561_s6 }
  0x99   : > { %p3124_p2 = scmp.ne.s32.totalorder %s3123_s12, 0 }
  0x9b   : > { %2477 = dma.done.wait (%p3124_p2), %s250_s10, 4096  }
  0x9c   : > { %2479 = vsyncadd (%p3124_p2), %s250_s10, 4294963200  ;;  %p3125_p9 = scmp.eq.s32.totalorder %s2648_s29, 0 }
  0x9e   : > { %2481 = dma.done.wait (%p3125_p9), [#allocation7], 2048   ;;  %p3126_p12 = pmov %p3125_p9 }
  0x9f   : > { %s3127_s5 = sld [smem:[#allocation15_spill]]  ;;  %s3128_s30 = sld [smem:[#allocation16_spill]] }
  0xa0   : > { %2483 = vsyncadd (%p3126_p12), [#allocation7], 4294965248 }
  0xa5   : > { %s284_s13 = sand.u32 1, %s3127_s5   ;;  %p1564_p1 = scmp.ne.s32.totalorder %s3128_s30, 0 }
  0xa6   : > { %s1563_s11 = sshll.u32 %s284_s13, 7  ;;  %v2552_v0 = vmov (!%p1564_p1), 0.0  }
  0xa7   : > { %s2874_s3 = scalar_lea.vmem [#allocation9], %s1563_s11  ;;  %295 = sbr.rel (%p1564_p1) target bundleno = 183 (0xb7), region = 52  ;;  %296 = vst [vmem:[#allocation2] sm:$0xff] (!%p1564_p1), %v2552_v0  ;;  %297 = vst [vmem:[#allocation2 + $0x8] sm:$0xff] (!%p1564_p1), %v2552_v0 }
  0xa8   : > { %298 = vst [vmem:[#allocation2 + $0x10] sm:$0xff] (!%p1564_p1), %v2552_v0  ;;  %299 = vst [vmem:[#allocation2 + $0x18] sm:$0xff] (!%p1564_p1), %v2552_v0 }
  0xa9   : > { %300 = vst [vmem:[#allocation2 + $0x20] sm:$0xff] (!%p1564_p1), %v2552_v0  ;;  %301 = vst [vmem:[#allocation2 + $0x28] sm:$0xff] (!%p1564_p1), %v2552_v0 }
  0xaa   : > { %302 = vst [vmem:[#allocation2 + $0x30] sm:$0xff] (!%p1564_p1), %v2552_v0  ;;  %303 = vst [vmem:[#allocation2 + $0x38] sm:$0xff] (!%p1564_p1), %v2552_v0 }
  0xab   : > { %304 = vst [vmem:[#allocation2 + $0x40] sm:$0xff] (!%p1564_p1), %v2552_v0  ;;  %305 = vst [vmem:[#allocation2 + $0x48] sm:$0xff] (!%p1564_p1), %v2552_v0 }
  0xac   : > { %306 = vst [vmem:[#allocation2 + $0x50] sm:$0xff] (!%p1564_p1), %v2552_v0  ;;  %307 = vst [vmem:[#allocation2 + $0x58] sm:$0xff] (!%p1564_p1), %v2552_v0 }
  0xad   : > { %308 = vst [vmem:[#allocation2 + $0x60] sm:$0xff] (!%p1564_p1), %v2552_v0  ;;  %309 = vst [vmem:[#allocation2 + $0x68] sm:$0xff] (!%p1564_p1), %v2552_v0 }
  0xae   : > { %310 = vst [vmem:[#allocation2 + $0x70] sm:$0xff] %v2552_v0  ;;  %311 = vst [vmem:[#allocation2 + $0x78] sm:$0xff] %v2552_v0 }
  0xaf   : > { %312 = vst [vmem:[#allocation2 + $0x80] sm:$0xff] %v2552_v0  ;;  %313 = vst [vmem:[#allocation2 + $0x88] sm:$0xff] %v2552_v0 }
  0xb0   : > { %314 = vst [vmem:[#allocation2 + $0x90] sm:$0xff] %v2552_v0  ;;  %315 = vst [vmem:[#allocation2 + $0x98] sm:$0xff] %v2552_v0 }
  0xb1   : > { %316 = vst [vmem:[#allocation2 + $0xa0] sm:$0xff] %v2552_v0  ;;  %317 = vst [vmem:[#allocation2 + $0xa8] sm:$0xff] %v2552_v0 }
  0xb2   : > { %318 = vst [vmem:[#allocation2 + $0xb0] sm:$0xff] %v2552_v0  ;;  %319 = vst [vmem:[#allocation2 + $0xb8] sm:$0xff] %v2552_v0 }
  0xb3   : > { %320 = vst [vmem:[#allocation2 + $0xc0] sm:$0xff] %v2552_v0  ;;  %321 = vst [vmem:[#allocation2 + $0xc8] sm:$0xff] %v2552_v0 }
  0xb4   : > { %322 = vst [vmem:[#allocation2 + $0xd0] sm:$0xff] %v2552_v0  ;;  %323 = vst [vmem:[#allocation2 + $0xd8] sm:$0xff] %v2552_v0 }
  0xb5   : > { %324 = vst [vmem:[#allocation2 + $0xe0] sm:$0xff] %v2552_v0  ;;  %325 = vst [vmem:[#allocation2 + $0xe8] sm:$0xff] %v2552_v0 }
  0xb6   : > { %326 = vst [vmem:[#allocation2 + $0xf0] sm:$0xff] %v2552_v0  ;;  %327 = vst [vmem:[#allocation2 + $0xf8] sm:$0xff] %v2552_v0 }
  0xb7 PF: > { %v2236_v1 = vld [vmem:[%s2853_s2 + $0x40] sm:$0xff]   ;;  %v2238_v3 = vld [vmem:[%s2853_s2 + $0x48] sm:$0xff]   ;;  %v2240_v5 = vld [vmem:[%s2853_s2 + $0x50] sm:$0xff]   ;;  %s3129_s29 = sld [smem:[#allocation16_spill]] }
  0xb8   : > { %v2237_v2 = vld [vmem:[%s2853_s2] sm:$0xff]   ;;  %1782 = vmatprep.subr.bf16.mxu0 %v2236_v1  ;;  %2054 = vmatprep.subr.bf16.mxu1 %v2236_v1  ;;  %v2239_v4 = vld [vmem:[%s2853_s2 + $0x8] sm:$0xff]   ;;  %v2241_v6 = vld [vmem:[%s2853_s2 + $0x10] sm:$0xff]  }
  0xb9   : > { %1783 = vmatpush3.bf16.msra.mxu0 %v2237_v2  ;;  %2062 = vmatpush3.bf16.msra.mxu1 %v2237_v2  ;;  %v2242_v7 = vld [vmem:[%s2853_s2 + $0x58] sm:$0xff]   ;;  %v2244_v9 = vld [vmem:[%s2853_s2 + $0x60] sm:$0xff]   ;;  %v2246_v11 = vld [vmem:[%s2853_s2 + $0x68] sm:$0xff]  }
  0xba   : > { %1784 = vmatprep.subr.bf16.mxu0 %v2238_v3  ;;  %2055 = vmatprep.subr.bf16.mxu1 %v2238_v3  ;;  %v2243_v8 = vld [vmem:[%s2853_s2 + $0x18] sm:$0xff]   ;;  %v2245_v10 = vld [vmem:[%s2853_s2 + $0x20] sm:$0xff]   ;;  %v2247_v14 = vld [vmem:[%s2853_s2 + $0x28] sm:$0xff]  }
  0xbb   : > { %v2254_v12 = vld [vmem:[%s2861_s9 + $0x4] ss:$8 sps:$4 sm:$0xff]   ;;  %v2248_v15 = vld [vmem:[%s2853_s2 + $0x70] sm:$0xff]   ;;  %v2250_v17 = vld [vmem:[%s2853_s2 + $0x78] sm:$0xff]  }
  0xbc   : > { %v2257_v13 = vld [vmem:[%s2861_s9 + $0x84] ss:$8 sps:$4 sm:$0xff]   ;;  %712 = vmatprep.mubr.bf16.mxu0 %v2254_v12  ;;  %v2249_v16 = vld [vmem:[%s2853_s2 + $0x30] sm:$0xff]   ;;  %v2251_v18 = vld [vmem:[%s2853_s2 + $0x38] sm:$0xff]  }
  0xbd   : > { %1785 = vmatpush3.bf16.msra.mxu0 %v2239_v4  ;;  %2063 = vmatpush3.bf16.msra.mxu1 %v2239_v4  ;;  %v2252_v19 = vld [vmem:[%s2861_s9] ss:$8 sps:$4 sm:$0xff]   ;;  %v2258_v21 = vld [vmem:[%s2861_s9 + $0x14] ss:$8 sps:$4 sm:$0xff]   ;;  %v2262_v23 = vld [vmem:[%s2861_s9 + $0x10] ss:$8 sps:$4 sm:$0xff]  }
  0xbe   : > { %1786 = vmatprep.subr.bf16.mxu0 %v2240_v5  ;;  %2056 = vmatprep.subr.bf16.mxu1 %v2240_v5  ;;  %v2255_v20 = vld [vmem:[%s2861_s9 + $0x80] ss:$8 sps:$4 sm:$0xff]   ;;  %v2260_v22 = vld [vmem:[%s2861_s9 + $0x94] ss:$8 sps:$4 sm:$0xff]   ;;  %v2263_v24 = vld [vmem:[%s2861_s9 + $0x90] ss:$8 sps:$4 sm:$0xff]  }
  0xbf   : > { %776 = vmatprep.mubr.bf16.mxu1 %v2257_v13  ;;  %v2264_v25 = vld [vmem:[%s2861_s9 + $0x24] ss:$8 sps:$4 sm:$0xff]   ;;  %v2268_v27 = vld [vmem:[%s2861_s9 + $0x20] ss:$8 sps:$4 sm:$0xff]   ;;  %v2270_v29 = vld [vmem:[%s2861_s9 + $0x34] ss:$8 sps:$4 sm:$0xff]  }
  0xc0   : > { %v2266_v26 = vld [vmem:[%s2861_s9 + $0xa4] ss:$8 sps:$4 sm:$0xff]   ;;  %v2269_v28 = vld [vmem:[%s2861_s9 + $0xa0] ss:$8 sps:$4 sm:$0xff]   ;;  %v2272_v30 = vld [vmem:[%s2861_s9 + $0xb4] ss:$8 sps:$4 sm:$0xff]  }
  0xc1   : > { %1787 = vmatpush3.bf16.msra.mxu0 %v2241_v6  ;;  %2064 = vmatpush3.bf16.msra.mxu1 %v2241_v6  ;;  %v2274_v31 = vld [vmem:[%s2861_s9 + $0x30] ss:$8 sps:$4 sm:$0xff]   ;;  %v2276_v33 = vld [vmem:[%s2861_s9 + $0x44] ss:$8 sps:$4 sm:$0xff]   ;;  %v2280_v35 = vld [vmem:[%s2861_s9 + $0x40] ss:$8 sps:$4 sm:$0xff]  }
  0xc2   : > { %1788 = vmatprep.subr.bf16.mxu0 %v2242_v7  ;;  %2057 = vmatprep.subr.bf16.mxu1 %v2242_v7  ;;  %v2275_v32 = vld [vmem:[%s2861_s9 + $0xb0] ss:$8 sps:$4 sm:$0xff]   ;;  %v2278_v34 = vld [vmem:[%s2861_s9 + $0xc4] ss:$8 sps:$4 sm:$0xff]   ;;  %v2281_v36 = vld [vmem:[%s2861_s9 + $0xc0] ss:$8 sps:$4 sm:$0xff]  }
  0xc3   : > { %v2282_v37 = vld [vmem:[%s2861_s9 + $0x54] ss:$8 sps:$4 sm:$0xff]   ;;  %v2286_v39 = vld [vmem:[%s2861_s9 + $0x50] ss:$8 sps:$4 sm:$0xff]   ;;  %v2288_v41 = vld [vmem:[%s2861_s9 + $0x64] ss:$8 sps:$4 sm:$0xff]  }
  0xc4   : > { %v2284_v38 = vld [vmem:[%s2861_s9 + $0xd4] ss:$8 sps:$4 sm:$0xff]   ;;  %v2287_v40 = vld [vmem:[%s2861_s9 + $0xd0] ss:$8 sps:$4 sm:$0xff]   ;;  %v2290_v42 = vld [vmem:[%s2861_s9 + $0xe4] ss:$8 sps:$4 sm:$0xff]  }
  0xc5   : > { %1789 = vmatpush3.bf16.msra.mxu0 %v2243_v8  ;;  %2065 = vmatpush3.bf16.msra.mxu1 %v2243_v8  ;;  %v2292_v43 = vld [vmem:[%s2861_s9 + $0x60] ss:$8 sps:$4 sm:$0xff]   ;;  %v2294_v45 = vld [vmem:[%s2861_s9 + $0x74] ss:$8 sps:$4 sm:$0xff]   ;;  %v2298_v47 = vld [vmem:[%s2861_s9 + $0x70] ss:$8 sps:$4 sm:$0xff]  }
  0xc6   : > { %1790 = vmatprep.subr.bf16.mxu0 %v2244_v9  ;;  %2058 = vmatprep.subr.bf16.mxu1 %v2244_v9  ;;  %v2293_v44 = vld [vmem:[%s2861_s9 + $0xe0] ss:$8 sps:$4 sm:$0xff]   ;;  %v2296_v46 = vld [vmem:[%s2861_s9 + $0xf4] ss:$8 sps:$4 sm:$0xff]   ;;  %v2299_v48 = vld [vmem:[%s2861_s9 + $0xf0] ss:$8 sps:$4 sm:$0xff]  }
  0xc7   : > { %v328_v51 = vld [vmem:[#allocation2] sm:$0xff]  ;;  %v329_v59 = vld [vmem:[#allocation2 + $0x8] sm:$0xff]  ;;  %v330_v7 = vld [vmem:[#allocation2 + $0x10] sm:$0xff]  ;;  %p1613_p4 = scmp.ne.s32.totalorder %s3129_s29, 1 }
  0xc8   : > { %v344_v53 = vld [vmem:[#allocation2 + $0x80] sm:$0xff]  ;;  %v345_v61 = vld [vmem:[#allocation2 + $0x88] sm:$0xff]  ;;  %v346_v9 = vld [vmem:[#allocation2 + $0x90] sm:$0xff]  ;;  %s3130_s7 = sld [smem:[#allocation25_spill]] (!%p1613_p4) }
  0xc9   : > { %1791 = vmatpush3.bf16.msra.mxu0 %v2245_v10  ;;  %2066 = vmatpush3.bf16.msra.mxu1 %v2245_v10 }
  0xca   : > { %1792 = vmatprep.subr.bf16.mxu0 %v2246_v11  ;;  %2059 = vmatprep.subr.bf16.mxu1 %v2246_v11 }
  0xcd   : > { %1793 = vmatpush3.bf16.msra.mxu0 %v2247_v14  ;;  %2067 = vmatpush3.bf16.msra.mxu1 %v2247_v14 }
  0xce   : > { %1794 = vmatprep.subr.bf16.mxu0 %v2248_v15  ;;  %2060 = vmatprep.subr.bf16.mxu1 %v2248_v15  ;;  %v331_v15 = vld [vmem:[#allocation2 + $0x18] sm:$0xff] }
  0xd1   : > { %1795 = vmatpush3.bf16.msra.mxu0 %v2249_v16  ;;  %2068 = vmatpush3.bf16.msra.mxu1 %v2249_v16 }
  0xd2   : > { %1796 = vmatprep.subr.bf16.mxu0 %v2250_v17  ;;  %2061 = vmatprep.subr.bf16.mxu1 %v2250_v17  ;;  %v347_v17 = vld [vmem:[#allocation2 + $0x98] sm:$0xff] }
  0xd5   : > { %1797 = vmatpush3.bf16.msra.mxu0 %v2251_v18  ;;  %2069 = vmatpush3.bf16.msra.mxu1 %v2251_v18 }
  0xd8   : > { %713 = vmatmul.mubr.bf16.vlgmr.msra.gmra.mrb[0].mxu0 %v2252_v19  ;;  %777 = vmatmul.mubr.bf16.vlgmr.msra.gmra.mrb[0].mxu1 %v2255_v20 }
  0xd9   : > { %720 = vmatprep.mubr.bf16.mxu0 %v2258_v21  ;;  %784 = vmatprep.mubr.bf16.mxu1 %v2260_v22 }
  0xe0   : > { %721 = vmatmul.mubr.bf16.gmra.mrb[4].mxu0 %v2262_v23  ;;  %785 = vmatmul.mubr.bf16.gmra.mrb[4].mxu1 %v2263_v24 }
  0xe1   : > { %728 = vmatprep.mubr.bf16.mxu0 %v2264_v25  ;;  %792 = vmatprep.mubr.bf16.mxu1 %v2266_v26 }
  0xe8   : > { %729 = vmatmul.mubr.bf16.gmra.mrb[8].mxu0 %v2268_v27  ;;  %793 = vmatmul.mubr.bf16.gmra.mrb[8].mxu1 %v2269_v28  ;;  %v332_v27 = vld [vmem:[#allocation2 + $0x20] sm:$0xff] }
  0xe9   : > { %736 = vmatprep.mubr.bf16.mxu0 %v2270_v29  ;;  %800 = vmatprep.mubr.bf16.mxu1 %v2272_v30  ;;  %v348_v29 = vld [vmem:[#allocation2 + $0xa0] sm:$0xff] }
  0xf0   : > { %737 = vmatmul.mubr.bf16.gmra.mrb[12].mxu0 %v2274_v31  ;;  %801 = vmatmul.mubr.bf16.gmra.mrb[12].mxu1 %v2275_v32 }
  0xf1   : > { %744 = vmatprep.mubr.bf16.mxu0 %v2276_v33  ;;  %808 = vmatprep.mubr.bf16.mxu1 %v2278_v34 }
  0xf8   : > { %745 = vmatmul.mubr.bf16.gmra.mrb[16].mxu0 %v2280_v35  ;;  %809 = vmatmul.mubr.bf16.gmra.mrb[16].mxu1 %v2281_v36  ;;  %v333_v35 = vld [vmem:[#allocation2 + $0x28] sm:$0xff] }
  0xf9   : > { %752 = vmatprep.mubr.bf16.mxu0 %v2282_v37  ;;  %816 = vmatprep.mubr.bf16.mxu1 %v2284_v38  ;;  %v349_v37 = vld [vmem:[#allocation2 + $0xa8] sm:$0xff] }
 0x100   : > { %753 = vmatmul.mubr.bf16.gmra.mrb[20].mxu0 %v2286_v39  ;;  %817 = vmatmul.mubr.bf16.gmra.mrb[20].mxu1 %v2287_v40 }
 0x101   : > { %760 = vmatprep.mubr.bf16.mxu0 %v2288_v41  ;;  %824 = vmatprep.mubr.bf16.mxu1 %v2290_v42 }
 0x108   : > { %761 = vmatmul.mubr.bf16.gmra.mrb[24].mxu0 %v2292_v43  ;;  %825 = vmatmul.mubr.bf16.gmra.mrb[24].mxu1 %v2293_v44 }
 0x109   : > { %768 = vmatprep.mubr.bf16.mxu0 %v2294_v45  ;;  %832 = vmatprep.mubr.bf16.mxu1 %v2296_v46 }
 0x110   : > { %769 = vmatmul.mubr.bf16.gmra.mrb[28].mxu0 %v2298_v47  ;;  %833 = vmatmul.mubr.bf16.gmra.mrb[28].mxu1 %v2299_v48  ;;  %v334_v47 = vld [vmem:[#allocation2 + $0x30] sm:$0xff] }
 0x1ab   : > { %v1798_v49 = vpop.f32.mrb[0].mxu0  ;;  %v1846_v50 = vpop.f32.mrb[0].mxu1 }
 0x1ac   : > { %v1799_v52 = vpop.f32.mrb[1].mxu0  ;;  %v1847_v54 = vpop.f32.mrb[1].mxu1 }
 0x1ad   : > { %v1800_v55 = vadd.f32 %v1799_v52, %v1798_v49  ;;  %v1848_v56 = vadd.f32 %v1847_v54, %v1846_v50  ;;  %v1801_v57 = vpop.f32.mrb[2].mxu0  ;;  %v1849_v58 = vpop.f32.mrb[2].mxu1  ;;  %v350_v49 = vld [vmem:[#allocation2 + $0xb0] sm:$0xff] }
 0x1ae   : > { %v1802_v60 = vpop.f32.mrb[3].mxu0  ;;  %v1850_v62 = vpop.f32.mrb[3].mxu1 }
 0x1af   : > { %v841_v63 = vadd.f32 %v1800_v55, %v328_v51  ;;  %v857_v0 = vadd.f32 %v1848_v56, %v344_v53  ;;  %v1803_v1 = vadd.f32 %v1802_v60, %v1801_v57  ;;  %v1851_v2 = vadd.f32 %v1850_v62, %v1849_v58  ;;  %v335_v55 = vld [vmem:[#allocation2 + $0x38] sm:$0xff] }
 0x1b0   : > { %v351_v57 = vld [vmem:[#allocation2 + $0xb8] sm:$0xff] }
 0x1b1   : > { %873 = vst [vmem:[#allocation2] sm:$0xff] %v841_v63  ;;  %889 = vst [vmem:[#allocation2 + $0x80] sm:$0xff] %v857_v0  ;;  %v842_v3 = vadd.f32 %v1803_v1, %v329_v59  ;;  %v858_v4 = vadd.f32 %v1851_v2, %v345_v61 }
 0x1b3   : > { %874 = vst [vmem:[#allocation2 + $0x8] sm:$0xff] %v842_v3  ;;  %890 = vst [vmem:[#allocation2 + $0x88] sm:$0xff] %v858_v4  ;;  %v1804_v5 = vpop.f32.mrb[4].mxu0  ;;  %v1852_v6 = vpop.f32.mrb[4].mxu1  ;;  %v336_v3 = vld [vmem:[#allocation2 + $0x40] sm:$0xff] }
 0x1b4   : > { %v1805_v8 = vpop.f32.mrb[5].mxu0  ;;  %v1853_v10 = vpop.f32.mrb[5].mxu1 }
 0x1b5   : > { %v1806_v11 = vadd.f32 %v1805_v8, %v1804_v5  ;;  %v1854_v12 = vadd.f32 %v1853_v10, %v1852_v6  ;;  %v1807_v13 = vpop.f32.mrb[6].mxu0  ;;  %v1855_v14 = vpop.f32.mrb[6].mxu1  ;;  %v352_v5 = vld [vmem:[#allocation2 + $0xc0] sm:$0xff] }
 0x1b6   : > { %v1808_v16 = vpop.f32.mrb[7].mxu0  ;;  %v1856_v18 = vpop.f32.mrb[7].mxu1 }
 0x1b7   : > { %v843_v19 = vadd.f32 %v1806_v11, %v330_v7  ;;  %v859_v20 = vadd.f32 %v1854_v12, %v346_v9  ;;  %v1809_v21 = vadd.f32 %v1808_v16, %v1807_v13  ;;  %v1857_v22 = vadd.f32 %v1856_v18, %v1855_v14  ;;  %v337_v11 = vld [vmem:[#allocation2 + $0x48] sm:$0xff] }
 0x1b8   : > { %v353_v13 = vld [vmem:[#allocation2 + $0xc8] sm:$0xff] }
 0x1b9   : > { %875 = vst [vmem:[#allocation2 + $0x10] sm:$0xff] %v843_v19  ;;  %891 = vst [vmem:[#allocation2 + $0x90] sm:$0xff] %v859_v20  ;;  %v844_v23 = vadd.f32 %v1809_v21, %v331_v15  ;;  %v860_v24 = vadd.f32 %v1857_v22, %v347_v17 }
 0x1bb   : > { %876 = vst [vmem:[#allocation2 + $0x18] sm:$0xff] %v844_v23  ;;  %892 = vst [vmem:[#allocation2 + $0x98] sm:$0xff] %v860_v24  ;;  %v1810_v25 = vpop.f32.mrb[8].mxu0  ;;  %v1858_v26 = vpop.f32.mrb[8].mxu1  ;;  %v338_v23 = vld [vmem:[#allocation2 + $0x50] sm:$0xff] }
 0x1bc   : > { %v1811_v28 = vpop.f32.mrb[9].mxu0  ;;  %v1859_v30 = vpop.f32.mrb[9].mxu1 }
 0x1bd   : > { %v1812_v31 = vadd.f32 %v1811_v28, %v1810_v25  ;;  %v1860_v32 = vadd.f32 %v1859_v30, %v1858_v26  ;;  %v1813_v33 = vpop.f32.mrb[10].mxu0  ;;  %v1861_v34 = vpop.f32.mrb[10].mxu1  ;;  %v354_v25 = vld [vmem:[#allocation2 + $0xd0] sm:$0xff] }
 0x1be   : > { %v1814_v36 = vpop.f32.mrb[11].mxu0  ;;  %v1862_v38 = vpop.f32.mrb[11].mxu1 }
 0x1bf   : > { %v845_v39 = vadd.f32 %v1812_v31, %v332_v27  ;;  %v861_v40 = vadd.f32 %v1860_v32, %v348_v29  ;;  %v1815_v41 = vadd.f32 %v1814_v36, %v1813_v33  ;;  %v1863_v42 = vadd.f32 %v1862_v38, %v1861_v34  ;;  %v339_v31 = vld [vmem:[#allocation2 + $0x58] sm:$0xff] }
 0x1c0   : > { %v355_v33 = vld [vmem:[#allocation2 + $0xd8] sm:$0xff] }
 0x1c1   : > { %877 = vst [vmem:[#allocation2 + $0x20] sm:$0xff] %v845_v39  ;;  %893 = vst [vmem:[#allocation2 + $0xa0] sm:$0xff] %v861_v40  ;;  %v846_v43 = vadd.f32 %v1815_v41, %v333_v35  ;;  %v862_v44 = vadd.f32 %v1863_v42, %v349_v37 }
 0x1c3   : > { %878 = vst [vmem:[#allocation2 + $0x28] sm:$0xff] %v846_v43  ;;  %894 = vst [vmem:[#allocation2 + $0xa8] sm:$0xff] %v862_v44  ;;  %v1816_v45 = vpop.f32.mrb[12].mxu0  ;;  %v1864_v46 = vpop.f32.mrb[12].mxu1  ;;  %v340_v43 = vld [vmem:[#allocation2 + $0x60] sm:$0xff] }
 0x1c4   : > { %v1817_v48 = vpop.f32.mrb[13].mxu0  ;;  %v1865_v50 = vpop.f32.mrb[13].mxu1 }
 0x1c5   : > { %v1818_v51 = vadd.f32 %v1817_v48, %v1816_v45  ;;  %v1866_v52 = vadd.f32 %v1865_v50, %v1864_v46  ;;  %v1819_v53 = vpop.f32.mrb[14].mxu0  ;;  %v1867_v54 = vpop.f32.mrb[14].mxu1  ;;  %v356_v45 = vld [vmem:[#allocation2 + $0xe0] sm:$0xff] }
 0x1c6   : > { %v1820_v56 = vpop.f32.mrb[15].mxu0  ;;  %v1868_v58 = vpop.f32.mrb[15].mxu1 }
 0x1c7   : > { %v847_v59 = vadd.f32 %v1818_v51, %v334_v47  ;;  %v863_v60 = vadd.f32 %v1866_v52, %v350_v49  ;;  %v1821_v61 = vadd.f32 %v1820_v56, %v1819_v53  ;;  %v1869_v62 = vadd.f32 %v1868_v58, %v1867_v54  ;;  %v341_v51 = vld [vmem:[#allocation2 + $0x68] sm:$0xff] }
 0x1c8   : > { %v357_v53 = vld [vmem:[#allocation2 + $0xe8] sm:$0xff] }
 0x1c9   : > { %879 = vst [vmem:[#allocation2 + $0x30] sm:$0xff] %v847_v59  ;;  %895 = vst [vmem:[#allocation2 + $0xb0] sm:$0xff] %v863_v60  ;;  %v848_v63 = vadd.f32 %v1821_v61, %v335_v55  ;;  %v864_v0 = vadd.f32 %v1869_v62, %v351_v57 }
 0x1cb   : > { %880 = vst [vmem:[#allocation2 + $0x38] sm:$0xff] %v848_v63  ;;  %896 = vst [vmem:[#allocation2 + $0xb8] sm:$0xff] %v864_v0  ;;  %v1822_v1 = vpop.f32.mrb[16].mxu0  ;;  %v1870_v2 = vpop.f32.mrb[16].mxu1  ;;  %v342_v63 = vld [vmem:[#allocation2 + $0x70] sm:$0xff] }
 0x1cc   : > { %v1823_v4 = vpop.f32.mrb[17].mxu0  ;;  %v1871_v6 = vpop.f32.mrb[17].mxu1 }
 0x1cd   : > { %v1824_v7 = vadd.f32 %v1823_v4, %v1822_v1  ;;  %v1872_v8 = vadd.f32 %v1871_v6, %v1870_v2  ;;  %v1825_v9 = vpop.f32.mrb[18].mxu0  ;;  %v1873_v10 = vpop.f32.mrb[18].mxu1  ;;  %v358_v1 = vld [vmem:[#allocation2 + $0xf0] sm:$0xff] }
 0x1ce   : > { %v1826_v12 = vpop.f32.mrb[19].mxu0  ;;  %v1874_v14 = vpop.f32.mrb[19].mxu1 }
 0x1cf   : > { %v849_v15 = vadd.f32 %v1824_v7, %v336_v3  ;;  %v865_v16 = vadd.f32 %v1872_v8, %v352_v5  ;;  %v1827_v17 = vadd.f32 %v1826_v12, %v1825_v9  ;;  %v1875_v18 = vadd.f32 %v1874_v14, %v1873_v10  ;;  %v343_v7 = vld [vmem:[#allocation2 + $0x78] sm:$0xff] }
 0x1d0   : > { %v359_v9 = vld [vmem:[#allocation2 + $0xf8] sm:$0xff] }
 0x1d1   : > { %881 = vst [vmem:[#allocation2 + $0x40] sm:$0xff] %v849_v15  ;;  %897 = vst [vmem:[#allocation2 + $0xc0] sm:$0xff] %v865_v16  ;;  %v850_v19 = vadd.f32 %v1827_v17, %v337_v11  ;;  %v866_v20 = vadd.f32 %v1875_v18, %v353_v13  ;;  %v1012_v17 = vld [vmem:[#allocation8] sm:$0xff] (!%p1613_p4)  ;;  %v1013_v18 = vld [vmem:[#allocation8 + $0x8] sm:$0xff] (!%p1613_p4) }
 0x1d3   : > { %882 = vst [vmem:[#allocation2 + $0x48] sm:$0xff] %v850_v19  ;;  %898 = vst [vmem:[#allocation2 + $0xc8] sm:$0xff] %v866_v20  ;;  %v1828_v21 = vpop.f32.mrb[20].mxu0  ;;  %v1876_v22 = vpop.f32.mrb[20].mxu1  ;;  %v1014_v19 = vld [vmem:[#allocation8 + $0x10] sm:$0xff] (!%p1613_p4)  ;;  %v2022_v20 = vpack.c.bf16 (!%p1613_p4), %v1013_v18, %v1012_v17  ;;  %v932_v17 = vld [vmem:[#allocation2 + $0xb8] sm:$0xff] (!%p1613_p4) }
 0x1d4   : > { %v1829_v24 = vpop.f32.mrb[21].mxu0  ;;  %v1877_v26 = vpop.f32.mrb[21].mxu1 }
 0x1d5   : > { %v1830_v27 = vadd.f32 %v1829_v24, %v1828_v21  ;;  %v1878_v28 = vadd.f32 %v1877_v26, %v1876_v22  ;;  %v1831_v29 = vpop.f32.mrb[22].mxu0  ;;  %v1879_v30 = vpop.f32.mrb[22].mxu1  ;;  %v1015_v21 = vld [vmem:[#allocation8 + $0x18] sm:$0xff] (!%p1613_p4)  ;;  %v1017_v24 = vld [vmem:[#allocation8 + $0x28] sm:$0xff] (!%p1613_p4)  ;;  %2023 = vmatprep.subr.bf16.mxu0 (!%p1613_p4), %v2022_v20  ;;  %2070 = vmatprep.subr.bf16.mxu1 (!%p1613_p4), %v2022_v20  ;;  %v909_v26 = vld [vmem:[#allocation2] sm:$0xff] (!%p1613_p4) }
 0x1d6   : > { %v1832_v32 = vpop.f32.mrb[23].mxu0  ;;  %v1880_v34 = vpop.f32.mrb[23].mxu1  ;;  %v2026_v22 = vpack.c.bf16 (!%p1613_p4), %v1015_v21, %v1014_v19  ;;  %2025 = vmatpush3.bf16.msra.mxu0 (!%p1613_p4), %v2022_v20  ;;  %2078 = vmatpush3.bf16.msra.mxu1 (!%p1613_p4), %v2022_v20 }
 0x1d7   : > { %v851_v35 = vadd.f32 %v1830_v27, %v338_v23  ;;  %v867_v36 = vadd.f32 %v1878_v28, %v354_v25  ;;  %v1833_v37 = vadd.f32 %v1832_v32, %v1831_v29  ;;  %v1881_v38 = vadd.f32 %v1880_v34, %v1879_v30  ;;  %v1016_v23 = vld [vmem:[#allocation8 + $0x20] sm:$0xff] (!%p1613_p4)  ;;  %v1018_v28 = vld [vmem:[#allocation8 + $0x30] sm:$0xff] (!%p1613_p4)  ;;  %v1019_v29 = vld [vmem:[#allocation8 + $0x38] sm:$0xff] (!%p1613_p4) }
 0x1d8   : > { %2027 = vmatprep.subr.bf16.mxu0 (!%p1613_p4), %v2026_v22  ;;  %2071 = vmatprep.subr.bf16.mxu1 (!%p1613_p4), %v2026_v22  ;;  %v2030_v25 = vpack.c.bf16 (!%p1613_p4), %v1017_v24, %v1016_v23  ;;  %v2929_v27 = vld [vmem:[%s3130_s7] ss:$0 sm:$0xff] (!%p1613_p4)  ;;  %v2034_v34 = vpack.c.bf16 (!%p1613_p4), %v1019_v29, %v1018_v28 }
 0x1d9   : > { %883 = vst [vmem:[#allocation2 + $0x50] sm:$0xff] %v851_v35  ;;  %899 = vst [vmem:[#allocation2 + $0xd0] sm:$0xff] %v867_v36  ;;  %v852_v39 = vadd.f32 %v1833_v37, %v339_v31  ;;  %v868_v40 = vadd.f32 %v1881_v38, %v355_v33  ;;  %v948_v30 = vadd.f32 (!%p1613_p4), %v2929_v27, %v909_v26  ;;  %v925_v31 = vld [vmem:[#allocation2 + $0x80] sm:$0xff] (!%p1613_p4)  ;;  %v1021_v37 = vld [vmem:[#allocation8 + $0x48] sm:$0xff] (!%p1613_p4) }
 0x1da   : > { %v964_v32 = vadd.f32 (!%p1613_p4), %v2929_v27, %v925_v31  ;;  %2029 = vmatpush3.bf16.msra.mxu0 (!%p1613_p4), %v2026_v22  ;;  %2079 = vmatpush3.bf16.msra.mxu1 (!%p1613_p4), %v2026_v22  ;;  %v1020_v36 = vld [vmem:[#allocation8 + $0x40] sm:$0xff] (!%p1613_p4)  ;;  %v971_v23 = vadd.f32 (!%p1613_p4), %v2929_v27, %v932_v17  ;;  %v918_v29 = vld [vmem:[#allocation2 + $0x48] sm:$0xff] (!%p1613_p4) }
 0x1db   : > { %884 = vst [vmem:[#allocation2 + $0x58] sm:$0xff] %v852_v39  ;;  %900 = vst [vmem:[#allocation2 + $0xd8] sm:$0xff] %v868_v40  ;;  %v1834_v41 = vpop.f32.mrb[24].mxu0  ;;  %v1882_v42 = vpop.f32.mrb[24].mxu1  ;;  %v980_v33 = vmax.f32 (!%p1613_p4), %v948_v30, 0.0  ;;  %2031 = vmatprep.subr.bf16.mxu0 (!%p1613_p4), %v2030_v25  ;;  %2072 = vmatprep.subr.bf16.mxu1 (!%p1613_p4), %v2030_v25  ;;  %v2038_v38 = vpack.c.bf16 (!%p1613_p4), %v1021_v37, %v1020_v36  ;;  %v1022_v39 = vld [vmem:[#allocation8 + $0x50] sm:$0xff] (!%p1613_p4) }
 0x1dc   : > { %v1835_v44 = vpop.f32.mrb[25].mxu0  ;;  %v1883_v46 = vpop.f32.mrb[25].mxu1  ;;  %v996_v35 = vmax.f32 (!%p1613_p4), %v964_v32, 0.0  ;;  %v1023_v40 = vld [vmem:[#allocation8 + $0x58] sm:$0xff] (!%p1613_p4)  ;;  %v917_v18 = vld [vmem:[#allocation2 + $0x40] sm:$0xff] (!%p1613_p4)  ;;  %v934_v30 = vld [vmem:[#allocation2 + $0xc8] sm:$0xff] (!%p1613_p4) }
 0x1dd   : > { %v1836_v47 = vadd.f32 %v1835_v44, %v1834_v41  ;;  %v1884_v48 = vadd.f32 %v1883_v46, %v1882_v42  ;;  %v1837_v49 = vpop.f32.mrb[26].mxu0  ;;  %v1885_v50 = vpop.f32.mrb[26].mxu1  ;;  %1974 = vmatprep.mubr.f32.mxu0 (!%p1613_p4), %v980_v33  ;;  %v2042_v41 = vpack.c.bf16 (!%p1613_p4), %v1023_v40, %v1022_v39  ;;  %v1024_v42 = vld [vmem:[#allocation8 + $0x60] sm:$0xff] (!%p1613_p4)  ;;  %v1027_v46 = vld [vmem:[#allocation8 + $0x78] sm:$0xff] (!%p1613_p4)  ;;  %v956_v26 = vadd.f32 (!%p1613_p4), %v2929_v27, %v917_v18 }
 0x1de   : > { %v1838_v52 = vpop.f32.mrb[27].mxu0  ;;  %v1886_v54 = vpop.f32.mrb[27].mxu1  ;;  %1998 = vmatprep.mubr.f32.mxu1 (!%p1613_p4), %v996_v35  ;;  %2033 = vmatpush3.bf16.msra.mxu0 (!%p1613_p4), %v2030_v25  ;;  %v933_v19 = vld [vmem:[#allocation2 + $0xc0] sm:$0xff] (!%p1613_p4)  ;;  %v957_v35 = vadd.f32 (!%p1613_p4), %v2929_v27, %v918_v29  ;;  %v973_v36 = vadd.f32 (!%p1613_p4), %v2929_v27, %v934_v30 }
 0x1df   : > { %v853_v55 = vadd.f32 %v1836_v47, %v340_v43  ;;  %v869_v56 = vadd.f32 %v1884_v48, %v356_v45  ;;  %v1839_v57 = vadd.f32 %v1838_v52, %v1837_v49  ;;  %v1887_v58 = vadd.f32 %v1886_v54, %v1885_v50  ;;  %2080 = vmatpush3.bf16.msra.mxu1 (!%p1613_p4), %v2030_v25  ;;  %v1025_v43 = vld [vmem:[#allocation8 + $0x68] sm:$0xff] (!%p1613_p4)  ;;  %v1026_v45 = vld [vmem:[#allocation8 + $0x70] sm:$0xff] (!%p1613_p4) }
 0x1e0   : > { %2035 = vmatprep.subr.bf16.mxu0 (!%p1613_p4), %v2034_v34  ;;  %2073 = vmatprep.subr.bf16.mxu1 (!%p1613_p4), %v2034_v34  ;;  %v2046_v44 = vpack.c.bf16 (!%p1613_p4), %v1025_v43, %v1024_v42  ;;  %v910_v47 = vld [vmem:[#allocation2 + $0x8] sm:$0xff] (!%p1613_p4)  ;;  %v2050_v49 = vpack.c.bf16 (!%p1613_p4), %v1027_v46, %v1026_v45  ;;  %v911_v50 = vld [vmem:[#allocation2 + $0x10] sm:$0xff] (!%p1613_p4)  ;;  %v972_v28 = vadd.f32 (!%p1613_p4), %v2929_v27, %v933_v19  ;;  %v988_v37 = vmax.f32 (!%p1613_p4), %v956_v26, 0.0 }
 0x1e1   : > { %885 = vst [vmem:[#allocation2 + $0x60] sm:$0xff] %v853_v55  ;;  %901 = vst [vmem:[#allocation2 + $0xe0] sm:$0xff] %v869_v56  ;;  %v854_v59 = vadd.f32 %v1839_v57, %v341_v51  ;;  %v870_v60 = vadd.f32 %v1887_v58, %v357_v53  ;;  %v926_v48 = vld [vmem:[#allocation2 + $0x88] sm:$0xff] (!%p1613_p4)  ;;  %v927_v51 = vld [vmem:[#allocation2 + $0x90] sm:$0xff] (!%p1613_p4)  ;;  %v949_v52 = vadd.f32 (!%p1613_p4), %v2929_v27, %v910_v47  ;;  %v989_v45 = vmax.f32 (!%p1613_p4), %v957_v35, 0.0 }
 0x1e2   : > { %2037 = vmatpush3.bf16.msra.mxu0 (!%p1613_p4), %v2034_v34  ;;  %v965_v53 = vadd.f32 (!%p1613_p4), %v2929_v27, %v926_v48  ;;  %v950_v54 = vadd.f32 (!%p1613_p4), %v2929_v27, %v911_v50  ;;  %v966_v55 = vadd.f32 (!%p1613_p4), %v2929_v27, %v927_v51  ;;  %v912_v56 = vld [vmem:[#allocation2 + $0x18] sm:$0xff] (!%p1613_p4)  ;;  %v913_v58 = vld [vmem:[#allocation2 + $0x20] sm:$0xff] (!%p1613_p4)  ;;  %v919_v31 = vld [vmem:[#allocation2 + $0x50] sm:$0xff] (!%p1613_p4)  ;;  %v1005_v46 = vmax.f32 (!%p1613_p4), %v973_v36, 0.0 }
 0x1e3   : > { %886 = vst [vmem:[#allocation2 + $0x68] sm:$0xff] %v854_v59  ;;  %902 = vst [vmem:[#allocation2 + $0xe8] sm:$0xff] %v870_v60  ;;  %v1840_v61 = vpop.f32.mrb[28].mxu0  ;;  %v1888_v62 = vpop.f32.mrb[28].mxu1  ;;  %2081 = vmatpush3.bf16.msra.mxu1 (!%p1613_p4), %v2034_v34  ;;  %2039 = vmatprep.subr.bf16.mxu0 (!%p1613_p4), %v2038_v38  ;;  %v928_v57 = vld [vmem:[#allocation2 + $0x98] sm:$0xff] (!%p1613_p4)  ;;  %v929_v59 = vld [vmem:[#allocation2 + $0xa0] sm:$0xff] (!%p1613_p4)  ;;  %v958_v39 = vadd.f32 (!%p1613_p4), %v2929_v27, %v919_v31 }
 0x1e4   : > { %v1841_v0 = vpop.f32.mrb[29].mxu0  ;;  %v1889_v2 = vpop.f32.mrb[29].mxu1  ;;  %2074 = vmatprep.subr.bf16.mxu1 (!%p1613_p4), %v2038_v38  ;;  %v981_v60 = vmax.f32 (!%p1613_p4), %v949_v52, 0.0  ;;  %v935_v32 = vld [vmem:[#allocation2 + $0xd0] sm:$0xff] (!%p1613_p4)  ;;  %v1003_v34 = vmax.f32 (!%p1613_p4), %v971_v23, 0.0  ;;  %v936_v42 = vld [vmem:[#allocation2 + $0xd8] sm:$0xff] (!%p1613_p4) }
 0x1e5   : > { %v1842_v3 = vadd.f32 %v1841_v0, %v1840_v61  ;;  %v1890_v4 = vadd.f32 %v1889_v2, %v1888_v62  ;;  %v1843_v5 = vpop.f32.mrb[30].mxu0  ;;  %v1891_v6 = vpop.f32.mrb[30].mxu1  ;;  %908 = sbr.rel (%p1613_p4) target bundleno = 746 (0x2ea), region = 56  ;;  %v997_v61 = vmax.f32 (!%p1613_p4), %v965_v53, 0.0  ;;  %v951_v62 = vadd.f32 (!%p1613_p4), %v2929_v27, %v912_v56 }
 0x1e6   : > { %v1844_v8 = vpop.f32.mrb[31].mxu0  ;;  %v1892_v10 = vpop.f32.mrb[31].mxu1  ;;  %2041 = vmatpush3.bf16.msra.mxu0 (!%p1613_p4), %v2038_v38  ;;  %v982_v0 = vmax.f32 (!%p1613_p4), %v950_v54, 0.0  ;;  %v952_v2 = vadd.f32 (!%p1613_p4), %v2929_v27, %v913_v58  ;;  %v974_v40 = vadd.f32 (!%p1613_p4), %v2929_v27, %v935_v32  ;;  %v975_v48 = vadd.f32 (!%p1613_p4), %v2929_v27, %v936_v42 }
 0x1e7   : > { %v855_v11 = vadd.f32 %v1842_v3, %v342_v63  ;;  %v871_v12 = vadd.f32 %v1890_v4, %v358_v1  ;;  %v1845_v13 = vadd.f32 %v1844_v8, %v1843_v5  ;;  %v1893_v14 = vadd.f32 %v1892_v10, %v1891_v6  ;;  %2082 = vmatpush3.bf16.msra.mxu1 (!%p1613_p4), %v2038_v38  ;;  %v914_v4 = vld [vmem:[#allocation2 + $0x28] sm:$0xff] (!%p1613_p4)  ;;  %v915_v6 = vld [vmem:[#allocation2 + $0x30] sm:$0xff] (!%p1613_p4) }
 0x1e8   : > { %2043 = vmatprep.subr.bf16.mxu0 (!%p1613_p4), %v2042_v41  ;;  %2075 = vmatprep.subr.bf16.mxu1 (!%p1613_p4), %v2042_v41  ;;  %v967_v63 = vadd.f32 (!%p1613_p4), %v2929_v27, %v928_v57  ;;  %v998_v1 = vmax.f32 (!%p1613_p4), %v966_v55, 0.0  ;;  %v968_v3 = vadd.f32 (!%p1613_p4), %v2929_v27, %v929_v59  ;;  %v930_v5 = vld [vmem:[#allocation2 + $0xa8] sm:$0xff] (!%p1613_p4)  ;;  %v983_v8 = vmax.f32 (!%p1613_p4), %v951_v62, 0.0  ;;  %v921_v43 = vld [vmem:[#allocation2 + $0x60] sm:$0xff] (!%p1613_p4) }
 0x1e9   : > { %887 = vst [vmem:[#allocation2 + $0x70] sm:$0xff] %v855_v11  ;;  %903 = vst [vmem:[#allocation2 + $0xf0] sm:$0xff] %v871_v12  ;;  %v856_v15 = vadd.f32 %v1845_v13, %v343_v7  ;;  %v872_v16 = vadd.f32 %v1893_v14, %v359_v9  ;;  %v931_v7 = vld [vmem:[#allocation2 + $0xb0] sm:$0xff] (!%p1613_p4)  ;;  %v953_v10 = vadd.f32 (!%p1613_p4), %v2929_v27, %v914_v4  ;;  %v984_v12 = vmax.f32 (!%p1613_p4), %v952_v2, 0.0 }
 0x1ea   : > { %2045 = vmatpush3.bf16.msra.mxu0 (!%p1613_p4), %v2042_v41  ;;  %v999_v9 = vmax.f32 (!%p1613_p4), %v967_v63, 0.0  ;;  %v969_v11 = vadd.f32 (!%p1613_p4), %v2929_v27, %v930_v5  ;;  %v1000_v13 = vmax.f32 (!%p1613_p4), %v968_v3, 0.0  ;;  %v954_v14 = vadd.f32 (!%p1613_p4), %v2929_v27, %v915_v6  ;;  %v922_v53 = vld [vmem:[#allocation2 + $0x68] sm:$0xff] (!%p1613_p4) }
 0x1eb   : > { %888 = vst [vmem:[#allocation2 + $0x78] sm:$0xff] %v856_v15  ;;  %904 = vst [vmem:[#allocation2 + $0xf8] sm:$0xff] %v872_v16  ;;  %2083 = vmatpush3.bf16.msra.mxu1 (!%p1613_p4), %v2042_v41  ;;  %2047 = vmatprep.subr.bf16.mxu0 (!%p1613_p4), %v2046_v44  ;;  %v970_v15 = vadd.f32 (!%p1613_p4), %v2929_v27, %v931_v7  ;;  %v916_v16 = vld [vmem:[#allocation2 + $0x38] sm:$0xff] (!%p1613_p4)  ;;  %v985_v20 = vmax.f32 (!%p1613_p4), %v953_v10, 0.0  ;;  %v1004_v38 = vmax.f32 (!%p1613_p4), %v972_v28, 0.0  ;;  %v1006_v50 = vmax.f32 (!%p1613_p4), %v974_v40, 0.0 }
 0x1ec   : > { %2076 = vmatprep.subr.bf16.mxu1 %v2046_v44  ;;  %v1001_v21 = vmax.f32 %v969_v11, 0.0  ;;  %v955_v22 = vadd.f32 %v2929_v27, %v916_v16  ;;  %v986_v24 = vmax.f32 %v954_v14, 0.0  ;;  %v920_v41 = vld [vmem:[#allocation2 + $0x58] sm:$0xff]  ;;  %v960_v51 = vadd.f32 %v2929_v27, %v921_v43  ;;  %v938_v54 = vld [vmem:[#allocation2 + $0xe8] sm:$0xff] }
 0x1ed   : > { %v1002_v25 = vmax.f32 %v970_v15, 0.0  ;;  %v959_v47 = vadd.f32 %v2929_v27, %v920_v41  ;;  %v1007_v58 = vmax.f32 %v975_v48, 0.0  ;;  %v961_v59 = vadd.f32 %v2929_v27, %v922_v53 }
 0x1ee   : > { %2049 = vmatpush3.bf16.msra.mxu0 %v2046_v44  ;;  %v987_v33 = vmax.f32 %v955_v22, 0.0 }
 0x1ef   : > { %2084 = vmatpush3.bf16.msra.mxu1 %v2046_v44  ;;  %2051 = vmatprep.subr.bf16.mxu0 %v2050_v49  ;;  %v937_v44 = vld [vmem:[#allocation2 + $0xe0] sm:$0xff]  ;;  %v991_v57 = vmax.f32 %v959_v47, 0.0  ;;  %v993_v3 = vmax.f32 %v961_v59, 0.0 }
 0x1f0   : > { %2077 = vmatprep.subr.bf16.mxu1 %v2050_v49  ;;  %v976_v52 = vadd.f32 %v2929_v27, %v937_v44  ;;  %v923_v55 = vld [vmem:[#allocation2 + $0x70] sm:$0xff] }
 0x1f1   : > { %v939_v56 = vld [vmem:[#allocation2 + $0xf0] sm:$0xff]  ;;  %v962_v63 = vadd.f32 %v2929_v27, %v923_v55 }
 0x1f2   : > { %2053 = vmatpush3.bf16.msra.mxu0 %v2050_v49  ;;  %v1008_v62 = vmax.f32 %v976_v52, 0.0  ;;  %v940_v2 = vld [vmem:[#allocation2 + $0xf8] sm:$0xff] }
 0x1f3   : > { %2085 = vmatpush3.bf16.msra.mxu1 %v2050_v49  ;;  %v990_v49 = vmax.f32 %v958_v39, 0.0  ;;  %v979_v6 = vadd.f32 %v2929_v27, %v940_v2  ;;  %v994_v7 = vmax.f32 %v962_v63, 0.0 }
 0x1f5   : > { %1975 = vmatmul.mubr.f32.vlgmr.msra.gmra.mrb[0].mxu0 %v981_v60  ;;  %v977_v60 = vadd.f32 %v2929_v27, %v938_v54  ;;  %v1011_v10 = vmax.f32 %v979_v6, 0.0 }
 0x1f6   : > { %1999 = vmatmul.mubr.f32.vlgmr.msra.gmra.mrb[0].mxu1 %v997_v61  ;;  %1977 = vmatprep.mubr.f32.mxu0 %v982_v0  ;;  %v992_v61 = vmax.f32 %v960_v51, 0.0  ;;  %v978_v0 = vadd.f32 %v2929_v27, %v939_v56 }
 0x1f7   : > { %2001 = vmatprep.mubr.f32.mxu1 %v998_v1  ;;  %v924_v1 = vld [vmem:[#allocation2 + $0x78] sm:$0xff]  ;;  %v1009_v4 = vmax.f32 %v977_v60, 0.0 }
 0x1f8   : > { %v963_v5 = vadd.f32 %v2929_v27, %v924_v1 }
 0x1f9   : > { %1978 = vmatmul.mubr.f32.gmra.mrb[2].mxu0 %v983_v8  ;;  %v1010_v8 = vmax.f32 %v978_v0, 0.0 }
 0x1fa   : > { %2002 = vmatmul.mubr.f32.gmra.mrb[2].mxu1 %v999_v9  ;;  %1980 = vmatprep.mubr.f32.mxu0 %v984_v12  ;;  %v995_v9 = vmax.f32 %v963_v5, 0.0 }
 0x1fb   : > { %2004 = vmatprep.mubr.f32.mxu1 %v1000_v13 }
 0x1fd   : > { %1981 = vmatmul.mubr.f32.gmra.mrb[4].mxu0 %v985_v20 }
 0x1fe   : > { %2005 = vmatmul.mubr.f32.gmra.mrb[4].mxu1 %v1001_v21  ;;  %1983 = vmatprep.mubr.f32.mxu0 %v986_v24 }
 0x1ff   : > { %2007 = vmatprep.mubr.f32.mxu1 %v1002_v25 }
 0x201   : > { %1984 = vmatmul.mubr.f32.gmra.mrb[6].mxu0 %v987_v33 }
 0x202   : > { %2008 = vmatmul.mubr.f32.gmra.mrb[6].mxu1 %v1003_v34  ;;  %1986 = vmatprep.mubr.f32.mxu0 %v988_v37 }
 0x203   : > { %2010 = vmatprep.mubr.f32.mxu1 %v1004_v38 }
 0x205   : > { %1987 = vmatmul.mubr.f32.gmra.mrb[8].mxu0 %v989_v45 }
 0x206   : > { %2011 = vmatmul.mubr.f32.gmra.mrb[8].mxu1 %v1005_v46  ;;  %1989 = vmatprep.mubr.f32.mxu0 %v990_v49 }
 0x207   : > { %2013 = vmatprep.mubr.f32.mxu1 %v1006_v50 }
 0x209   : > { %1990 = vmatmul.mubr.f32.gmra.mrb[10].mxu0 %v991_v57 }
 0x20a   : > { %2014 = vmatmul.mubr.f32.gmra.mrb[10].mxu1 %v1007_v58  ;;  %1992 = vmatprep.mubr.f32.mxu0 %v992_v61 }
 0x20b   : > { %2016 = vmatprep.mubr.f32.mxu1 %v1008_v62 }
 0x20d   : > { %1993 = vmatmul.mubr.f32.gmra.mrb[12].mxu0 %v993_v3 }
 0x20e   : > { %2017 = vmatmul.mubr.f32.gmra.mrb[12].mxu1 %v1009_v4  ;;  %1995 = vmatprep.mubr.f32.mxu0 %v994_v7 }
 0x20f   : > { %2019 = vmatprep.mubr.f32.mxu1 %v1010_v8 }
 0x211   : > { %1996 = vmatmul.mubr.f32.gmra.mrb[14].mxu0 %v995_v9 }
 0x212   : > { %2020 = vmatmul.mubr.f32.gmra.mrb[14].mxu1 %v1011_v10 }
 0x2c8   : > { %v1976_v11 = vpop.f32.mrb[0].mxu0 }
 0x2c9   : > { %v2000_v12 = vpop.f32.mrb[0].mxu1  ;;  %v1094_v13 = vpop.f32.mrb[1].mxu0 }
 0x2ca   : > { %v1174_v27 = vpop.f32.mrb[1].mxu1  ;;  %v1690_v14 = vpack.c.bf16 %v1976_v11, %v1094_v13 }
 0x2cb   : > { %v1730_v15 = vpack.c.bf16 %v2000_v12, %v1174_v27 }
 0x2cc   : > { %1691 = vst [vmem:[%s2874_s3] sm:$0xff] %v1690_v14   ;;  %v1979_v16 = vpop.f32.mrb[2].mxu0 }
 0x2cd   : > { %1774 = vst [vmem:[%s2874_s3 + $0x40] sm:$0xff] %v1730_v15   ;;  %v2003_v17 = vpop.f32.mrb[2].mxu1  ;;  %v1104_v18 = vpop.f32.mrb[3].mxu0 }
 0x2ce   : > { %v1184_v19 = vpop.f32.mrb[3].mxu1  ;;  %v1695_v20 = vpack.c.bf16 %v1979_v16, %v1104_v18 }
 0x2cf   : > { %v1735_v21 = vpack.c.bf16 %v2003_v17, %v1184_v19 }
 0x2d0   : > { %1767 = vst [vmem:[%s2874_s3 + $0x8] sm:$0xff] %v1695_v20   ;;  %v1982_v22 = vpop.f32.mrb[4].mxu0 }
 0x2d1   : > { %1775 = vst [vmem:[%s2874_s3 + $0x48] sm:$0xff] %v1735_v21   ;;  %v2006_v23 = vpop.f32.mrb[4].mxu1  ;;  %v1114_v24 = vpop.f32.mrb[5].mxu0 }
 0x2d2   : > { %v1194_v25 = vpop.f32.mrb[5].mxu1  ;;  %v1700_v26 = vpack.c.bf16 %v1982_v22, %v1114_v24 }
 0x2d3   : > { %v1740_v28 = vpack.c.bf16 %v2006_v23, %v1194_v25 }
 0x2d4   : > { %1768 = vst [vmem:[%s2874_s3 + $0x10] sm:$0xff] %v1700_v26   ;;  %v1985_v29 = vpop.f32.mrb[6].mxu0 }
 0x2d5   : > { %1776 = vst [vmem:[%s2874_s3 + $0x50] sm:$0xff] %v1740_v28   ;;  %v2009_v30 = vpop.f32.mrb[6].mxu1  ;;  %v1124_v31 = vpop.f32.mrb[7].mxu0 }
 0x2d6   : > { %v1204_v32 = vpop.f32.mrb[7].mxu1  ;;  %v1705_v33 = vpack.c.bf16 %v1985_v29, %v1124_v31 }
 0x2d7   : > { %v1745_v34 = vpack.c.bf16 %v2009_v30, %v1204_v32 }
 0x2d8   : > { %1769 = vst [vmem:[%s2874_s3 + $0x18] sm:$0xff] %v1705_v33   ;;  %v1988_v35 = vpop.f32.mrb[8].mxu0 }
 0x2d9   : > { %1777 = vst [vmem:[%s2874_s3 + $0x58] sm:$0xff] %v1745_v34   ;;  %v2012_v36 = vpop.f32.mrb[8].mxu1  ;;  %v1134_v37 = vpop.f32.mrb[9].mxu0 }
 0x2da   : > { %v1214_v38 = vpop.f32.mrb[9].mxu1  ;;  %v1710_v39 = vpack.c.bf16 %v1988_v35, %v1134_v37 }
 0x2db   : > { %v1750_v40 = vpack.c.bf16 %v2012_v36, %v1214_v38 }
 0x2dc   : > { %1770 = vst [vmem:[%s2874_s3 + $0x20] sm:$0xff] %v1710_v39   ;;  %v1991_v41 = vpop.f32.mrb[10].mxu0 }
 0x2dd   : > { %1778 = vst [vmem:[%s2874_s3 + $0x60] sm:$0xff] %v1750_v40   ;;  %v2015_v42 = vpop.f32.mrb[10].mxu1  ;;  %v1144_v43 = vpop.f32.mrb[11].mxu0 }
 0x2de   : > { %v1224_v44 = vpop.f32.mrb[11].mxu1  ;;  %v1715_v45 = vpack.c.bf16 %v1991_v41, %v1144_v43 }
 0x2df   : > { %v1755_v46 = vpack.c.bf16 %v2015_v42, %v1224_v44 }
 0x2e0   : > { %1771 = vst [vmem:[%s2874_s3 + $0x28] sm:$0xff] %v1715_v45   ;;  %v1994_v47 = vpop.f32.mrb[12].mxu0 }
 0x2e1   : > { %1779 = vst [vmem:[%s2874_s3 + $0x68] sm:$0xff] %v1755_v46   ;;  %v2018_v48 = vpop.f32.mrb[12].mxu1  ;;  %v1154_v49 = vpop.f32.mrb[13].mxu0 }
 0x2e2   : > { %v1234_v50 = vpop.f32.mrb[13].mxu1  ;;  %v1720_v51 = vpack.c.bf16 %v1994_v47, %v1154_v49 }
 0x2e3   : > { %v1760_v52 = vpack.c.bf16 %v2018_v48, %v1234_v50 }
 0x2e4   : > { %1772 = vst [vmem:[%s2874_s3 + $0x30] sm:$0xff] %v1720_v51   ;;  %v1997_v53 = vpop.f32.mrb[14].mxu0 }
 0x2e5   : > { %1780 = vst [vmem:[%s2874_s3 + $0x70] sm:$0xff] %v1760_v52   ;;  %v2021_v54 = vpop.f32.mrb[14].mxu1  ;;  %v1164_v55 = vpop.f32.mrb[15].mxu0 }
 0x2e6   : > { %v1244_v56 = vpop.f32.mrb[15].mxu1  ;;  %v1725_v57 = vpack.c.bf16 %v1997_v53, %v1164_v55 }
 0x2e7   : > { %v1765_v58 = vpack.c.bf16 %v2021_v54, %v1244_v56 }
 0x2e8   : > { %1773 = vst [vmem:[%s2874_s3 + $0x38] sm:$0xff] %v1725_v57  }
 0x2e9   : > { %1781 = vst [vmem:[%s2874_s3 + $0x78] sm:$0xff] %v1765_v58  }
 0x2ea PF: > { %s3131_s15 = sld [smem:[#allocation17_spill]]  ;;  %s3133_s0 = sld [smem:[#allocation19_spill]] }
 0x2eb   : > { %s3134_s14 = sld [smem:[#allocation27_spill]]  ;;  %s1427_s6 = sshll.u32 %s2874_s3, 4  ;;  %s2986_s6 = int_to_ptr.vmem [resolvable:$true] %s1427_s6 }
 0x2ec   : > { %s2990_s10 = scalar_lea.sflag [#allocation5], %s284_s13  ;;  %s2388_s9 = scalar_lea.vmem %s2986_s6, 2048 }
 0x2ed   : > { %p2389_p5 = scmp.ne.s32.totalorder %s2986_s6, %s2388_s9  ;;  %s2553_s5 = smov [#allocation9]  }
 0x2ee   : > { %s2392_s11 = sshll.u32 %s2553_s5, 4  ;;  %s2393_s11 = int_to_ptr.vmem [resolvable:$false] %s2392_s11 }
 0x2ef   : > { %s2394_s30 = scalar_lea.vmem %s2393_s11, 4096  ;;  %p2395_p10 = scmp.lt.s32.totalorder %s2986_s6, %s2393_s11 }
 0x2f0   : > { %s1686_s18 = sshll.u32 %s3131_s15, 11  ;;  %p3135_p11 = scmp.ne.s32.totalorder %s3133_s0, 0 }
 0x2f1   : > { %s2983_s21 = scalar_lea.hbm %s3134_s14, %s1686_s18  ;;  %p2396_p0 = scmp.lt.s32.totalorder %s2394_s30, %s2388_s9 }
 0x2f2   : > { %p2390_p3 = pnand %p2389_p5, %p3135_p11 }
 0x2f3   : > { %p2397_p8 = por %p2396_p0, %p2395_p10 }
 0x2f4   : > { %p2391_p6 = pneg %p2390_p3 }
 0x2f6   : > { %p2398_p7 = pnand %p2397_p8, %p2391_p6 }
 0x2f8   : > { %2401 = shalt.err (!%p2398_p7)
}
 0x2f9   : > { %s2402_s13 = scalar_lea.hbm %s2983_s21, 2048  ;;  %s2406_s24 = scalar_lea.hbm %s3134_s14, 4096 }
 0x2fa   : > { %p2403_p13 = scmp.ne.s32.totalorder %s2983_s21, %s2402_s13  ;;  %p2407_p12 = scmp.lt.u32.totalorder %s2983_s21, %s3134_s14 }
 0x2fb   : > { %p2408_p1 = scmp.lt.u32.totalorder %s2406_s24, %s2402_s13  ;;  %p2410_p5 = scmp.lt.u32.totalorder %s2402_s13, %s2983_s21 }
 0x2fc   : > { %p2404_p2 = pnand %p2403_p13, %p3135_p11 }
 0x2fd   : > { %p2409_p4 = por %p2408_p1, %p2407_p12 }
 0x2fe   : > { %p2405_p9 = pneg %p2404_p2 }
 0x2ff   : > { %p2411_p3 = por %p2410_p5, %p2409_p4 }
 0x301   : > { %p2412_p6 = pnand %p2411_p3, %p2405_p9 }
 0x303   : > { %2415 = shalt.err (!%p2412_p6)
}
 0x304   : > { %s2554_s15 = smov 64   ;;  %s2555_s16 = smov 4  }
 0x305   : > { %2094 = dma.vmem_to_hbm [thread:$0]  (%p3135_p11), %s2986_s6, 2048, %s2983_s21, %s2990_s10, %s2554_s15, %s2554_s15, %s2555_s16  }
 0x306 PF: > { %s3136_s18 = sld [smem:[#allocation14_spill]]  ;;  %s3137_s2 = sld [smem:[#allocation20_spill]] }
 0x307   : > { %p2114_p10 = scmp.ge.s32.totalorder %s2542_s28, 2 }
 0x30c   : > { %s1442_s12 = sand.u32 1, %s3136_s18   ;;  %p3138_p0 = scmp.ne.s32.totalorder %s3137_s2, 0 }
 0x30d   : > { %s1443_s9 = scalar_lea.sflag [#allocation5], %s1442_s12 }
 0x30e   : > { %p2108_p8 = pnand %p2114_p10, %p3138_p0 }
 0x310   : > { %2485 = dma.done.wait (!%p2108_p8), %s1443_s9, 2048  }
 0x311   : > { %2487 = vsyncadd (!%p2108_p8), %s1443_s9, 4294965248  ;;  %s23_s28 = sadd.s32 1, %s2542_s28   ;;  %s3140_s15 = sld [smem:[#allocation15_spill]] }
 0x312   : > { %p3019_p7 = scmp.ge.s32.totalorder %s23_s28, 6   ;;  %s3141_s0 = sld [smem:[#allocation23_spill]] }
 0x313   : > { %s3142_s6 = sld [smem:[#allocation21_spill]]  ;;  %s3143_s10 = sld [smem:[#allocation22_spill]] }
 0x314   : > { %s3144_s16 = smov %s2498_s17  ;;  %s3145_s17 = smov %s2750_s4 }
 0x315   : > { %s3146_s18 = smov %s2506_s19  ;;  %s3147_s19 = smov %s2510_s20 }
 0x316   : > { %s3148_s20 = smov %s2753_s8  ;;  %s3149_s21 = smov %s2518_s22 }
 0x317   : > { %s3150_s22 = smov %s2522_s23  ;;  %s3152_s24 = smov %s2534_s26 }
 0x318   : > { %s3151_s23 = smov %s3141_s0  ;;  %s3153_s25 = smov %s2538_s27 }
 0x319   : > { %s3154_s26 = smov %s3142_s6  ;;  %s3155_s27 = smov %s3143_s10 }
 0x31a   :  { %22 = sbr.rel (!%p3019_p7) target bundleno = 17 (0x11), region = 106 }
 0x321   :  { %1448 = vsyncpa [#allocation4], 1 }
 0x322   :  { %1450 = vsyncpa [#allocation4 + $0x1], 1 }
 0x323   :  { %1451 = vsyncpa [#allocation7], 1 }
 0x324   :  { %1453 = vsyncpa [#allocation7 + $0x1], 1 }
 0x325   :  { %1454 = vsyncpa [#allocation5], 1 }
 0x326   :  { %1456 = vsyncpa [#allocation5 + $0x1], 1 }

</bundles_post_ra>
